<compile_context>
chip_gen: v5e
topology: v5e:2x2
jax: 0.10.0
libtpu: 0.0.40
codegen_flags: <defaults>
</compile_context>

<pallas_src>
import functools

import jax
import jax.numpy as jnp
from jax.experimental import pallas as pl
from jax.experimental.pallas import tpu as pltpu


# =============================================================================
# Kernel 1: fused encoder branch (backbone fc + projection head), one call/branch
# =============================================================================
def _encoder_kernel(x_ref, w0_ref, b0_ref, w1_ref, b1_ref, w2_ref, b2_ref, z_ref):
    x = x_ref[...].astype(jnp.bfloat16)
    h = jnp.dot(x, w0_ref[...], preferred_element_type=jnp.float32) + b0_ref[...]
    h = jnp.maximum(h, 0.0).astype(jnp.bfloat16)
    h = jnp.dot(h, w1_ref[...], preferred_element_type=jnp.float32) + b1_ref[...]
    h = jnp.maximum(h, 0.0).astype(jnp.bfloat16)
    z = jnp.dot(h, w2_ref[...], preferred_element_type=jnp.float32) + b2_ref[...]
    z_ref[...] = z.astype(z_ref.dtype)


def pallas_encoder(x, enc):
    """x: (B, in_features) f32 -> z: (B, out_dim) f32."""
    w0, b0 = enc["fc0"]["w"], enc["fc0"]["b"]
    w1, b1 = enc["fc1"]["w"], enc["fc1"]["b"]
    w2, b2 = enc["fc2"]["w"], enc["fc2"]["b"]
    B, F = x.shape
    D0, D1, D2 = w0.shape[1], w1.shape[1], w2.shape[1]
    return pl.pallas_call(
        _encoder_kernel,
        out_shape=jax.ShapeDtypeStruct((B, D2), jnp.float32),
        grid=(1,),
        in_specs=[
            pl.BlockSpec((B, F), lambda i: (0, 0)),
            pl.BlockSpec((F, D0), lambda i: (0, 0)),
            pl.BlockSpec((1, D0), lambda i: (0, 0)),
            pl.BlockSpec((D0, D1), lambda i: (0, 0)),
            pl.BlockSpec((1, D1), lambda i: (0, 0)),
            pl.BlockSpec((D1, D2), lambda i: (0, 0)),
            pl.BlockSpec((1, D2), lambda i: (0, 0)),
        ],
        out_specs=pl.BlockSpec((B, D2), lambda i: (0, 0)),
        compiler_params=pltpu.CompilerParams(dimension_semantics=("arbitrary",)),
    )(x, w0, b0, w1, b1, w2, b2)


# =============================================================================
# Kernel 2: bank prep — L2-normalize each bank vector (column of (D, K)), -> bf16
# =============================================================================
def _bank_prep_kernel(bank_ref, out_ref):
    b = bank_ref[...].astype(jnp.float32)
    # F.normalize(dim=1, eps=1e-12):  x / max(||x||, 1e-12)
    inv = jax.lax.rsqrt(jnp.maximum(jnp.sum(b * b, axis=0, keepdims=True), 1e-24))
    out_ref[...] = (b * inv).astype(jnp.bfloat16)


def pallas_bank_prep(bank_dk, tile_k=512):
    D, K = bank_dk.shape
    tile_k = min(tile_k, K)
    assert K % tile_k == 0
    return pl.pallas_call(
        _bank_prep_kernel,
        out_shape=jax.ShapeDtypeStruct((D, K), jnp.bfloat16),
        grid=(K // tile_k,),
        in_specs=[pl.BlockSpec((D, tile_k), lambda k: (0, k))],
        out_specs=pl.BlockSpec((D, tile_k), lambda k: (0, k)),
        compiler_params=pltpu.CompilerParams(dimension_semantics=("parallel",)),
    )(bank_dk)


# =============================================================================
# Kernel 3: SCE contrastive loss, streamed over the bank (online softmax)
#   inputs : z_q (B, D) f32, z_k (B, D) f32, bank_n (D, K) bf16 (normalized)
#   output : per-row loss (B, 1) f32   (mean over B done by the caller)
# =============================================================================
def _sce_loss_kernel(zq_ref, zk_ref, bank_ref, loss_ref,
                     zqn_ref, zkn_ref, simt_ref,
                     mk_ref, sk_ref, ak_ref, mq_ref, sq_ref,
                     *, inv_tem, inv_tq, coeff):
    k = pl.program_id(1)
    nk = pl.num_programs(1)

    @pl.when(k == 0)
    def _init():
        zq = zq_ref[...].astype(jnp.float32)
        zk = zk_ref[...].astype(jnp.float32)
        inv_q = jax.lax.rsqrt(jnp.maximum(jnp.sum(zq * zq, axis=-1, keepdims=True), 1e-24))
        inv_k = jax.lax.rsqrt(jnp.maximum(jnp.sum(zk * zk, axis=-1, keepdims=True), 1e-24))
        zqn = zq * inv_q
        zkn = zk * inv_k
        zqn_ref[...] = zqn.astype(jnp.bfloat16)
        zkn_ref[...] = zkn.astype(jnp.bfloat16)
        simt_ref[...] = jnp.sum(zqn * zkn, axis=-1, keepdims=True)   # z_q . z_k (f32)
        mk_ref[...] = jnp.full_like(mk_ref, -jnp.inf)
        mq_ref[...] = jnp.full_like(mq_ref, -jnp.inf)
        sk_ref[...] = jnp.zeros_like(sk_ref)
        ak_ref[...] = jnp.zeros_like(ak_ref)
        sq_ref[...] = jnp.zeros_like(sq_ref)

    # Both similarity GEMMs against the SAME resident bank tile (read once).
    bank = bank_ref[...]                                                  # (D, TK) bf16
    lk = jnp.dot(zkn_ref[...], bank, preferred_element_type=jnp.float32) * inv_tem
    lq = jnp.dot(zqn_ref[...], bank, preferred_element_type=jnp.float32) * inv_tq

    # --- key-side streaming softmax stats (+ cross term sum e_k * lq) ---
    mk_new = jnp.maximum(mk_ref[...], jnp.max(lk, axis=-1, keepdims=True))
    alpha = jnp.exp(mk_ref[...] - mk_new)
    ek = jnp.exp(lk - mk_new)
    sk_ref[...] = sk_ref[...] * alpha + jnp.sum(ek, axis=-1, keepdims=True)
    ak_ref[...] = ak_ref[...] * alpha + jnp.sum(ek * lq, axis=-1, keepdims=True)
    mk_ref[...] = mk_new

    # --- query-side streaming logsumexp stats ---
    mq_new = jnp.maximum(mq_ref[...], jnp.max(lq, axis=-1, keepdims=True))
    beta = jnp.exp(mq_ref[...] - mq_new)
    sq_ref[...] = sq_ref[...] * beta + jnp.sum(jnp.exp(lq - mq_new), axis=-1, keepdims=True)
    mq_ref[...] = mq_new

    @pl.when(k == nk - 1)
    def _finalize():
        lq_t = simt_ref[...] * inv_tq                     # query-side target logit
        # key side: fold the analytic target column (logit exactly 0)
        mk_full = jnp.maximum(mk_ref[...], 0.0)
        scale_k = jnp.exp(mk_ref[...] - mk_full)
        e_t = jnp.exp(-mk_full)
        b_sum = sk_ref[...] * scale_k                     # sum_m exp(lk_m - mk_full)
        a_sum = ak_ref[...] * scale_k                     # sum_m exp(lk_m - mk_full) * lq_m
        denom_k = e_t + b_sum
        inv_denom_k = pl.reciprocal(denom_k, approx=True)
        p_t = e_t * inv_denom_k                           # prob_k[:, 0]
        # query side: logZ over [lq_t, lq_queue]
        mq_full = jnp.maximum(mq_ref[...], lq_t)
        denom_q = jnp.exp(lq_t - mq_full) + sq_ref[...] * jnp.exp(mq_ref[...] - mq_full)
        log_z = mq_full + jnp.log(denom_q)
        # w = L1-normalize(coeff * one_hot + (1 - coeff) * prob_k)
        w_t = coeff + (1.0 - coeff) * p_t
        sum_w = w_t + (1.0 - coeff) * b_sum * inv_denom_k
        inv_s = pl.reciprocal(jnp.maximum(sum_w, 1e-12), approx=True)
        # sum_m w_m * log_softmax_m = (1-coeff)/denom_k * (a_sum - log_z * b_sum)
        cross = (1.0 - coeff) * inv_denom_k * (a_sum - log_z * b_sum)
        loss_ref[...] = -(w_t * (lq_t - log_z) + cross) * inv_s


def pallas_sce_loss(z_q, z_k, bank_n_dk, *, tem=0.05, coeff=0.5, tq=0.1, tile_k=512):
    B, D = z_q.shape
    D2, K = bank_n_dk.shape
    assert D == D2 and z_k.shape == (B, D)
    tile_b = B if B <= 128 else 128
    assert B % tile_b == 0
    tile_k = min(tile_k, K)
    assert K % tile_k == 0
    kernel = functools.partial(_sce_loss_kernel,
                               inv_tem=1.0 / tem, inv_tq=1.0 / tq, coeff=coeff)
    per_row = pl.pallas_call(
        kernel,
        out_shape=jax.ShapeDtypeStruct((B, 1), jnp.float32),
        grid=(B // tile_b, K // tile_k),
        in_specs=[
            pl.BlockSpec((tile_b, D), lambda i, k: (i, 0)),
            pl.BlockSpec((tile_b, D), lambda i, k: (i, 0)),
            pl.BlockSpec((D, tile_k), lambda i, k: (0, k)),
        ],
        out_specs=pl.BlockSpec((tile_b, 1), lambda i, k: (i, 0)),
        scratch_shapes=[
            pltpu.VMEM((tile_b, D), jnp.bfloat16),   # normalized z_q (bf16 for MXU)
            pltpu.VMEM((tile_b, D), jnp.bfloat16),   # normalized z_k (bf16 for MXU)
            pltpu.VMEM((tile_b, 1), jnp.float32),    # z_q . z_k (target sim, f32)
            pltpu.VMEM((tile_b, 1), jnp.float32),    # key-side running max
            pltpu.VMEM((tile_b, 1), jnp.float32),    # key-side running sum-exp
            pltpu.VMEM((tile_b, 1), jnp.float32),    # running sum of e_k * lq
            pltpu.VMEM((tile_b, 1), jnp.float32),    # query-side running max
            pltpu.VMEM((tile_b, 1), jnp.float32),    # query-side running sum-exp
        ],
        compiler_params=pltpu.CompilerParams(
            dimension_semantics=("parallel", "arbitrary")),
    )(z_q, z_k, bank_n_dk)
    # Final mean over B is a trivial (B,)-reduce; done in plain JAX.
    return jnp.mean(per_row)


# =============================================================================
# Parameters (deterministic, synthetic) and SCE forward glue
# =============================================================================
def init_params(key, in_features, feat_dim=512, hidden_dim=2048, out_dim=256, K=1024):
    ks = jax.random.split(key, 4)

    def lin(kw, fan_in, fan_out):
        w = (jax.random.normal(kw, (fan_in, fan_out), jnp.float32)
             * jnp.sqrt(2.0 / fan_in)).astype(jnp.bfloat16)
        b = jnp.zeros((1, fan_out), jnp.float32)
        return {"w": w, "b": b}

    encoder = {"fc0": lin(ks[0], in_features, feat_dim),     # backbone stand-in
               "fc1": lin(ks[1], feat_dim, hidden_dim),      # MoCo head
               "fc2": lin(ks[2], hidden_dim, out_dim)}
    mom_encoder = jax.tree_util.tree_map(lambda x: x, encoder)   # deepcopy at init
    # memory bank stored contraction-major (dim, K) — native MemoryBankModule layout
    bank = jax.random.normal(ks[3], (out_dim, K), jnp.float32)
    return {"encoder": encoder, "mom_encoder": mom_encoder, "bank": bank}


def update_momentum(ema, model, m):
    # ema = ema * m + model * (1 - m)   (lightly.models.utils.update_momentum)
    return jax.tree_util.tree_map(
        lambda e, p: (e.astype(jnp.float32) * m + p.astype(jnp.float32) * (1.0 - m)).astype(e.dtype),
        ema, model)


def sce_forward(params, im1, im2, labels, *, momentum=-1.0, tem=0.05,
                coeff=0.5, symmetric=False):
    mom_encoder = update_momentum(params["mom_encoder"], params["encoder"], momentum)
    # Normalize + bf16-cast the bank ONCE per forward (shared by both branches).
    bank_n = pallas_bank_prep(params["bank"])

    def contrastive_loss(im_q, im_k):
        B = im_q.shape[0]
        z_q = pallas_encoder(im_q.reshape(B, -1), params["encoder"])
        # momentum branch (no grad in torch; shuffle/unshuffle cancel for our stand-in)
        z_k = jax.lax.stop_gradient(pallas_encoder(im_k.reshape(B, -1), mom_encoder))
        return pallas_sce_loss(z_q, z_k, bank_n, tem=tem, coeff=coeff, tq=0.1)

    if symmetric:
        loss_21 = contrastive_loss(im2, im1)
        loss_12 = contrastive_loss(im1, im2)
        return (loss_12 + loss_21) * 0.5
    return contrastive_loss(im1, im2)


if __name__ == "__main__":
    key = jax.random.PRNGKey(0)
    k_im1, k_im2, k_lab, k_par = jax.random.split(key, 4)

    B, C, H, W = 8, 3, 16, 16
    dim, K = 256, 1024     # K=1024 with tile_k=512 exercises the streamed reduction

    im1 = jax.random.normal(k_im1, (B, C, H, W), jnp.float32)
    im2 = jax.random.normal(k_im2, (B, C, H, W), jnp.float32)
    labels = jax.random.randint(k_lab, (B,), 0, 10)

    params = init_params(k_par, in_features=C * H * W, out_dim=dim, K=K)

    loss = sce_forward(params, im1, im2, labels, momentum=-1.0, tem=0.05,
                       coeff=0.5, symmetric=False)
    loss = jax.block_until_ready(loss)
    assert jnp.isfinite(loss)
    print("KERNEL_OK")
</pallas_src>

<mosaic_0001>
module attributes {stable_mosaic.version = 11 : i64} {
  func.func @_bank_prep_kernel(%arg0: i32, %arg1: memref<256x512xf32, #tpu.memory_space<vmem>>, %arg2: memref<256x512xbf16, #tpu.memory_space<vmem>>) attributes {dimension_semantics = [#tpu.dimension_semantics<parallel>], iteration_bounds = array<i64: 2>, scalar_prefetch = 0 : i64, scratch_operands = 0 : i64, tpu.core_type = #tpu.core_type<tc>, window_params = [{transform_indices = @transform_0, window_bounds = array<i64: 256, 512>}, {transform_indices = @transform_1, window_bounds = array<i64: 256, 512>}]} {
    %c0 = arith.constant 0 : index
    %c0_0 = arith.constant 0 : index
    %0 = vector.load %arg1[%c0, %c0_0] : memref<256x512xf32, #tpu.memory_space<vmem>>, vector<256x512xf32>
    %1 = arith.mulf %0, %0 : vector<256x512xf32>
    %cst = arith.constant dense<0.000000e+00> : vector<512xf32>
    %2 = vector.multi_reduction <add>, %1, %cst [0] : vector<256x512xf32> to vector<512xf32>
    %3 = vector.shape_cast %2 : vector<512xf32> to vector<1x512xf32>
    %cst_1 = arith.constant 1.000000e-24 : f32
    %4 = vector.broadcast %cst_1 : f32 to vector<1x512xf32>
    %5 = arith.maximumf %3, %4 : vector<1x512xf32>
    %6 = math.rsqrt %5 : vector<1x512xf32>
    %7 = vector.broadcast %6 : vector<1x512xf32> to vector<256x512xf32>
    %8 = arith.mulf %0, %7 : vector<256x512xf32>
    %9 = arith.truncf %8 : vector<256x512xf32> to vector<256x512xbf16>
    %c0_2 = arith.constant 0 : index
    %c0_3 = arith.constant 0 : index
    %10 = vector.load %arg2[%c0_2, %c0_3] : memref<256x512xbf16, #tpu.memory_space<vmem>>, vector<256x512xbf16>
    tpu.vector_store %arg2[%c0_2, %c0_3], %9 {strides = array<i32>} : memref<256x512xbf16, #tpu.memory_space<vmem>>, vector<256x512xbf16>,
    return
  }
  func.func @transform_0(%arg0: i32) -> (i32, i32) {
    %c0_i32 = arith.constant 0 : i32
    %c0_i32_0 = arith.constant 0 : i32
    return %c0_i32, %arg0 : i32, i32
  }
  func.func @transform_1(%arg0: i32) -> (i32, i32) {
    %c0_i32 = arith.constant 0 : i32
    %c0_i32_0 = arith.constant 0 : i32
    return %c0_i32, %arg0 : i32, i32
  }
}

</mosaic_0001>

<bundles_post_ra>
// kernel: tpu_custom_call.1
= control target key start
LH: loop header
LB: loop body
LE: loop exit
PB: predicated region body
PF: predicated region fallthrough
CT: control target
= control target key end

     0   :  { %6 = vsyncpa [#allocation3], 0  ;;  %s2256_s0 = inlined_call_operand.hbm [shape: f32[256,1024], index: 0, kind: input, shape index: {}]   ;;  %s2257_s1 = inlined_call_operand.hbm [shape: bf16[256,1024], index: 1, kind: output, shape index: {}]  }
   0x1   :  { %8 = vsyncpa [#allocation3 + $0x1], 0 }
   0x2   :  { %9 = vsyncpa [#allocation4], 0 }
   0x3   :  { %11 = vsyncpa [#allocation4 + $0x1], 0  ;;  %s1122_s6 = smov 0   ;;  %s1124_s7 = smov 0  }
   0x4   :  { %s1126_s8 = smov 0   ;;  %s1128_s9 = smov 0  }
   0x5 LB: > { %s1143_s10 = sadd.s32 4294967295, %s1104_s9   ;;  %s932_s11 = sadd.s32 4294967294, %s1104_s9   ;;  %s1104_s9 = sphi %s1128_s9, %s2524_s9   ;;  %s1100_s8 = sphi %s1126_s8, %s2523_s8   ;;  %s1096_s7 = sphi %s1124_s7, %s2522_s7   ;;  %s1092_s6 = sphi %s1122_s6, %s2521_s6  }
   0x6   : > { %s1147_s12 = sadd.s32 1, %s1104_s9   ;;  %s24_s13 = sadd.s32 1, %s1100_s8 }
   0x7   : > { %s21_s14 = ssub.s32 %s1104_s9, %s1147_s12  ;;  %p31_p0 = scmp.ne.s32.totalorder %s1100_s8, %s1096_s7 }
   0x8   : > { %p22_p1 = scmp.eq.s32.totalorder %s21_s14, 0  ;;  %p32_p2 = scmp.eq.s32.totalorder %s1104_s9, 0 }
   0x9   : > { %p37_p3 = scmp.ne.s32.totalorder %s1096_s7, %s1092_s6  ;;  %p38_p4 = scmp.eq.s32.totalorder %s1143_s10, 0 }
   0xa   : > { %s1159_s15 = scalar_select %p22_p1, %s1100_s8, %s24_s13  }
   0xb   : > { %p1161_p5 = por %p32_p2, %p31_p0  ;;  %p1165_p6 = por %p38_p4, %p37_p3 }
   0xc   : > { %p61_p7 = scmp.eq.s32.totalorder %s1143_s10, 1  ;;  %p67_p8 = scmp.eq.s32.totalorder %s932_s11, 1 }
   0xd   : > { %p934_p9 = scmp.ge.s32.totalorder %s1104_s9, 2  ;;  %p960_p10 = scmp.lt.s32.totalorder %s1104_s9, 2 }
   0xe   : > { %p1172_p11 = por %p61_p7, %p31_p0  ;;  %p1176_p12 = por %p67_p8, %p37_p3 }
   0xf   : > { %s87_s20 = sand.u32 1, %s1100_s8   ;;  %s946_s21 = sshll.u32 %s1104_s9, 5 }
  0x10   : > { %s935_s22 = sshll.u32 %s87_s20, 10  ;;  %s96_s25 = scalar_lea.hbm %s2256_s0, %s946_s21 }
  0x11   : > { %s97_s26 = sshll.u32 %s96_s25, 4  ;;  %s91_s27 = scalar_lea.vmem [#allocation2], %s935_s22  ;;  %s98_s26 = int_to_ptr.hbm [resolvable:$true] %s97_s26 }
  0x12   : > { %s99_s28 = sshll.u32 %s91_s27, 4  ;;  %p1187_p13 = pnand %p960_p10, %p1161_p5  ;;  %s100_s28 = int_to_ptr.vmem [resolvable:$true] %s99_s28 }
  0x13   : > { %p938_p0 = scmp.ge.s32.totalorder %s1104_s9, 1  ;;  %s88_s30 = scalar_lea.sflag [#allocation3], %s87_s20 }
  0x14   : > { %s1008_s2 = sshra.s32 %s98_s26, 4  ;;  %p1012_p2 = pneg %p1187_p13  ;;  %s1009_s2 = int_to_ptr.hbm [resolvable:$true] %s1008_s2 }
  0x15   : > { %s1010_s3 = scalar_lea.hbm %s1009_s2, 1024  ;;  %s1015_s11 = scalar_lea.hbm %s2256_s0, 2048 }
  0x16   : > { %p1011_p1 = scmp.ne.s32.totalorder %s1009_s2, %s1010_s3  ;;  %p1016_p5 = scmp.lt.s32.totalorder %s1009_s2, %s2256_s0 }
  0x17   : > { %p1017_p7 = scmp.lt.s32.totalorder %s1015_s11, %s1010_s3 }
  0x18   : > { %p1013_p3 = pnand %p1012_p2, %p1011_p1 }
  0x19   : > { %p1018_p8 = por %p1017_p7, %p1016_p5 }
  0x1a   : > { %p1014_p4 = pneg %p1013_p3 }
  0x1c   : > { %p1019_p10 = pnand %p1018_p8, %p1014_p4 }
  0x1e   : > { %1022 = shalt.err (!%p1019_p10)
}
  0x1f   : > { %s1106_s16 = smov 1024   ;;  %s1107_s20 = smov 512  }
  0x20   : > { %s1108_s21 = smov 32   ;;  %p107_p1 = scmp.lt.s32.totalorder %s1104_s9, 3 }
  0x21   : > { %955 = dma.hbm_to_vmem [thread:$0]  (!%p1187_p13), %s98_s26, 16384, %s100_s28, %s88_s30, %s1106_s16, %s1107_s20, %s1108_s21  }
  0x22   : > { %p108_p2 = pnand %p938_p0, %p107_p1 }
  0x24   : > { %111 = sbr.rel (%p108_p2) target bundleno = 235 (0xeb), region = 24 }
  0x29   : > { %s1206_s22 = sand.u32 1, %s1096_s7  }
  0x2a   : > { %s939_s23 = sshll.u32 %s1206_s22, 10  ;;  %s114_s24 = scalar_lea.sflag [#allocation3], %s1206_s22 }
  0x2b   : > { %s1210_s25 = scalar_lea.vmem [#allocation2], %s939_s23 }
  0x2c   : > { %1083 = dma.done.wait (%p1165_p6), %s114_s24, 16384  }
  0x2d   : > { %1085 = vsyncadd (%p1165_p6), %s114_s24, 4294950912  ;;  %v1217_v0 = vld [vmem:[%s1210_s25] sm:$0xff]  ;;  %v1220_v1 = vld [vmem:[%s1210_s25 + $0x8] sm:$0xff]  ;;  %s940_s17 = sshll.u32 %s1206_s22, 9  ;;  %s947_s27 = sshll.u32 %s1143_s10, 4 }
  0x2e   : > { %v1223_v2 = vld [vmem:[%s1210_s25 + $0x20] sm:$0xff]  ;;  %v1226_v3 = vld [vmem:[%s1210_s25 + $0x28] sm:$0xff]  ;;  %v267_v6 = vmul.f32 %v1217_v0, %v1217_v0  ;;  %v268_v7 = vmul.f32 %v1220_v1, %v1220_v1  ;;  %s1875_s26 = scalar_lea.vmem [#allocation5], %s940_s17  ;;  %s855_s30 = scalar_lea.hbm %s2257_s1, %s947_s27 }
  0x2f   : > { %v1229_v4 = vld [vmem:[%s1210_s25 + $0x40] sm:$0xff]  ;;  %v1232_v5 = vld [vmem:[%s1210_s25 + $0x48] sm:$0xff]  ;;  %v271_v8 = vmul.f32 %v1223_v2, %v1223_v2  ;;  %v272_v12 = vmul.f32 %v1226_v3, %v1226_v3  ;;  %s856_s10 = sshll.u32 %s1875_s26, 4  ;;  %s858_s2 = sshll.u32 %s855_s30, 4  ;;  %s857_s10 = int_to_ptr.vmem [resolvable:$true] %s856_s10  ;;  %s859_s2 = int_to_ptr.hbm [resolvable:$true] %s858_s2 }
  0x30   : > { %v1241_v9 = vld [vmem:[%s1210_s25 + $0x60] sm:$0xff]  ;;  %v1244_v10 = vld [vmem:[%s1210_s25 + $0x68] sm:$0xff]  ;;  %v275_v13 = vmul.f32 %v1229_v4, %v1229_v4  ;;  %v276_v14 = vmul.f32 %v1232_v5, %v1232_v5  ;;  %s844_s3 = scalar_lea.sflag [#allocation4], %s1206_s22  ;;  %s1052_s4 = sshra.s32 %s859_s2, 4  ;;  %s1053_s4 = int_to_ptr.hbm [resolvable:$true] %s1052_s4 }
  0x31   : > { %v1247_v11 = vld [vmem:[%s1210_s25 + $0x80] sm:$0xff]  ;;  %v1256_v15 = vld [vmem:[%s1210_s25 + $0x88] sm:$0xff]  ;;  %v279_v16 = vmul.f32 %v1241_v9, %v1241_v9  ;;  %v395_v17 = vadd.f32 %v271_v8, %v267_v6  ;;  %v280_v19 = vmul.f32 %v1244_v10, %v1244_v10  ;;  %v432_v20 = vadd.f32 %v272_v12, %v268_v7  ;;  %s1054_s5 = scalar_lea.hbm %s1053_s4, 512  ;;  %s1058_s14 = scalar_lea.hbm %s2257_s1, 1024 }
  0x32   : > { %v1261_v18 = vld [vmem:[%s1210_s25 + $0xa0] sm:$0xff]  ;;  %v1266_v21 = vld [vmem:[%s1210_s25 + $0xa8] sm:$0xff]  ;;  %v283_v22 = vmul.f32 %v1247_v11, %v1247_v11  ;;  %v284_v25 = vmul.f32 %v1256_v15, %v1256_v15  ;;  %p1055_p6 = scmp.ne.s32.totalorder %s1053_s4, %s1054_s5  ;;  %p1059_p3 = scmp.lt.s32.totalorder %s1053_s4, %s2257_s1 }
  0x33   : > { %v396_v23 = vadd.f32 %v395_v17, %v275_v13  ;;  %v1271_v24 = vld [vmem:[%s1210_s25 + $0xc0] sm:$0xff]  ;;  %v433_v26 = vadd.f32 %v432_v20, %v276_v14  ;;  %v1276_v27 = vld [vmem:[%s1210_s25 + $0xc8] sm:$0xff]  ;;  %v287_v28 = vmul.f32 %v1261_v18, %v1261_v18  ;;  %v288_v31 = vmul.f32 %v1266_v21, %v1266_v21  ;;  %p1060_p4 = scmp.lt.s32.totalorder %s1058_s14, %s1054_s5 }
  0x34   : > { %v1281_v30 = vld [vmem:[%s1210_s25 + $0xe0] sm:$0xff]  ;;  %v1286_v33 = vld [vmem:[%s1210_s25 + $0xe8] sm:$0xff]  ;;  %v291_v34 = vmul.f32 %v1271_v24, %v1271_v24  ;;  %v292_v37 = vmul.f32 %v1276_v27, %v1276_v27  ;;  %p1056_p13 = pnand %p1055_p6, %p1172_p11 }
  0x35   : > { %v397_v29 = vadd.f32 %v396_v23, %v279_v16  ;;  %v434_v32 = vadd.f32 %v433_v26, %v280_v19  ;;  %v1291_v36 = vld [vmem:[%s1210_s25 + $0x100] sm:$0xff]  ;;  %v1296_v39 = vld [vmem:[%s1210_s25 + $0x108] sm:$0xff]  ;;  %v295_v40 = vmul.f32 %v1281_v30, %v1281_v30  ;;  %v296_v43 = vmul.f32 %v1286_v33, %v1286_v33  ;;  %p1061_p5 = por %p1060_p4, %p1059_p3 }
  0x36   : > { %v1301_v42 = vld [vmem:[%s1210_s25 + $0x120] sm:$0xff]  ;;  %v1306_v45 = vld [vmem:[%s1210_s25 + $0x128] sm:$0xff]  ;;  %v299_v46 = vmul.f32 %v1291_v36, %v1291_v36  ;;  %v300_v49 = vmul.f32 %v1296_v39, %v1296_v39  ;;  %p1057_p0 = pneg %p1056_p13 }
  0x37   : > { %v398_v35 = vadd.f32 %v397_v29, %v283_v22  ;;  %v435_v38 = vadd.f32 %v434_v32, %v284_v25  ;;  %v1311_v48 = vld [vmem:[%s1210_s25 + $0x140] sm:$0xff]  ;;  %v1316_v51 = vld [vmem:[%s1210_s25 + $0x148] sm:$0xff]  ;;  %v303_v52 = vmul.f32 %v1301_v42, %v1301_v42  ;;  %v304_v55 = vmul.f32 %v1306_v45, %v1306_v45 }
  0x38   : > { %v1321_v54 = vld [vmem:[%s1210_s25 + $0x160] sm:$0xff]  ;;  %v1326_v57 = vld [vmem:[%s1210_s25 + $0x168] sm:$0xff]  ;;  %v307_v58 = vmul.f32 %v1311_v48, %v1311_v48  ;;  %v308_v61 = vmul.f32 %v1316_v51, %v1316_v51  ;;  %p1062_p7 = pnand %p1061_p5, %p1057_p0 }
  0x39   : > { %v399_v41 = vadd.f32 %v398_v35, %v287_v28  ;;  %v436_v44 = vadd.f32 %v435_v38, %v288_v31  ;;  %v1331_v60 = vld [vmem:[%s1210_s25 + $0x180] sm:$0xff]  ;;  %v1336_v63 = vld [vmem:[%s1210_s25 + $0x188] sm:$0xff]  ;;  %v311_v6 = vmul.f32 %v1321_v54, %v1321_v54  ;;  %v312_v12 = vmul.f32 %v1326_v57, %v1326_v57 }
  0x3a   : > { %v1341_v8 = vld [vmem:[%s1210_s25 + $0x1a0] sm:$0xff]  ;;  %v1346_v14 = vld [vmem:[%s1210_s25 + $0x1a8] sm:$0xff]  ;;  %v315_v16 = vmul.f32 %v1331_v60, %v1331_v60  ;;  %v316_v20 = vmul.f32 %v1336_v63, %v1336_v63 }
  0x3b   : > { %v400_v47 = vadd.f32 %v399_v41, %v291_v34  ;;  %v437_v50 = vadd.f32 %v436_v44, %v292_v37  ;;  %v1351_v19 = vld [vmem:[%s1210_s25 + $0x1c0] sm:$0xff]  ;;  %v1356_v23 = vld [vmem:[%s1210_s25 + $0x1c8] sm:$0xff]  ;;  %v319_v25 = vmul.f32 %v1341_v8, %v1341_v8  ;;  %v320_v29 = vmul.f32 %v1346_v14, %v1346_v14 }
  0x3c   : > { %v1361_v28 = vld [vmem:[%s1210_s25 + $0x1e0] sm:$0xff]  ;;  %v1366_v32 = vld [vmem:[%s1210_s25 + $0x1e8] sm:$0xff]  ;;  %v323_v34 = vmul.f32 %v1351_v19, %v1351_v19  ;;  %v324_v38 = vmul.f32 %v1356_v23, %v1356_v23 }
  0x3d   : > { %v401_v53 = vadd.f32 %v400_v47, %v295_v40  ;;  %v438_v56 = vadd.f32 %v437_v50, %v296_v43  ;;  %v1371_v37 = vld [vmem:[%s1210_s25 + $0x200] sm:$0xff]  ;;  %v1376_v41 = vld [vmem:[%s1210_s25 + $0x208] sm:$0xff]  ;;  %v327_v43 = vmul.f32 %v1361_v28, %v1361_v28  ;;  %v328_v47 = vmul.f32 %v1366_v32, %v1366_v32 }
  0x3e   : > { %v1386_v50 = vld [vmem:[%s1210_s25 + $0x228] sm:$0xff] }
  0x3f   : > { %v402_v59 = vadd.f32 %v401_v53, %v299_v46  ;;  %v439_v62 = vadd.f32 %v438_v56, %v300_v49  ;;  %v1381_v46 = vld [vmem:[%s1210_s25 + $0x220] sm:$0xff]  ;;  %2349 = vst [vmem:[#allocation8_spill] sm:$0xff] %v1386_v50  ;;  %v332_v56 = vmul.f32 %v1376_v41, %v1376_v41 }
  0x41   : > { %v403_v7 = vadd.f32 %v402_v59, %v303_v52  ;;  %v440_v13 = vadd.f32 %v439_v62, %v304_v55  ;;  %v331_v52 = vmul.f32 %v1371_v37, %v1371_v37  ;;  %v1391_v55 = vld [vmem:[%s1210_s25 + $0x240] sm:$0xff]  ;;  %v1396_v59 = vld [vmem:[%s1210_s25 + $0x248] sm:$0xff] }
  0x42   : > { %2350 = vst [vmem:[#allocation9_spill] sm:$0xff] %v1391_v55 }
  0x43   : > { %v404_v17 = vadd.f32 %v403_v7, %v307_v58  ;;  %v441_v22 = vadd.f32 %v440_v13, %v308_v61  ;;  %2351 = vst [vmem:[#allocation10_spill] sm:$0xff] %v1396_v59  ;;  %v335_v61 = vmul.f32 %v1381_v46, %v1381_v46  ;;  %v336_v7 = vmul.f32 %v1386_v50, %v1386_v50  ;;  %v1406_v13 = vld [vmem:[%s1210_s25 + $0x10] sm:$0xff] }
  0x44   : > { %2353 = vst [vmem:[#allocation12_spill] sm:$0xff] %v1406_v13 }
  0x45   : > { %v405_v26 = vadd.f32 %v404_v17, %v311_v6  ;;  %v442_v31 = vadd.f32 %v441_v22, %v312_v12  ;;  %v1401_v6 = vld [vmem:[%s1210_s25 + $0x260] sm:$0xff]  ;;  %v1412_v17 = vld [vmem:[%s1210_s25 + $0x268] sm:$0xff] }
  0x46   : > { %2352 = vst [vmem:[#allocation11_spill] sm:$0xff] %v1401_v6 }
  0x47   : > { %v406_v35 = vadd.f32 %v405_v26, %v315_v16  ;;  %v443_v40 = vadd.f32 %v442_v31, %v316_v20  ;;  %v1409_v16 = vld [vmem:[%s1210_s25 + $0x30] sm:$0xff]  ;;  %2355 = vst [vmem:[#allocation14_spill] sm:$0xff] %v1412_v17  ;;  %v339_v20 = vmul.f32 %v1391_v55, %v1391_v55  ;;  %v1420_v26 = vld [vmem:[%s1210_s25 + $0x38] sm:$0xff]  ;;  %v340_v31 = vmul.f32 %v1396_v59, %v1396_v59 }
  0x48   : > { %2354 = vst [vmem:[#allocation13_spill] sm:$0xff] %v1409_v16  ;;  %v1490_v55 = vld [vmem:[%s1210_s25 + $0xb0] sm:$0xff] }
  0x49   : > { %v407_v44 = vadd.f32 %v406_v35, %v319_v25  ;;  %v444_v49 = vadd.f32 %v443_v40, %v320_v29  ;;  %v1417_v25 = vld [vmem:[%s1210_s25 + $0x18] sm:$0xff]  ;;  %2357 = vst [vmem:[#allocation16_spill] sm:$0xff] %v1420_v26  ;;  %v1423_v29 = vld [vmem:[%s1210_s25 + $0x280] sm:$0xff]  ;;  %v1428_v35 = vld [vmem:[%s1210_s25 + $0x50] sm:$0xff]  ;;  %v343_v40 = vmul.f32 %v1401_v6, %v1401_v6 }
  0x4a   : > { %2356 = vst [vmem:[#allocation15_spill] sm:$0xff] %v1417_v25 }
  0x4b   : > { %v408_v53 = vadd.f32 %v407_v44, %v323_v34  ;;  %v445_v58 = vadd.f32 %v444_v49, %v324_v38  ;;  %2358 = vst [vmem:[#allocation17_spill] sm:$0xff] %v1423_v29  ;;  %v1431_v38 = vld [vmem:[%s1210_s25 + $0x288] sm:$0xff]  ;;  %v1436_v44 = vld [vmem:[%s1210_s25 + $0x58] sm:$0xff]  ;;  %v273_v49 = vmul.f32 %v1409_v16, %v1409_v16 }
  0x4c   : > { %2359 = vst [vmem:[#allocation18_spill] sm:$0xff] %v1428_v35  ;;  %v278_v6 = vmul.f32 %v1436_v44, %v1436_v44 }
  0x4d   : > { %v409_v62 = vadd.f32 %v408_v53, %v327_v43  ;;  %v446_v12 = vadd.f32 %v445_v58, %v328_v47  ;;  %2360 = vst [vmem:[#allocation19_spill] sm:$0xff] %v1431_v38  ;;  %v269_v47 = vmul.f32 %v1406_v13, %v1406_v13  ;;  %v344_v53 = vmul.f32 %v1412_v17, %v1412_v17  ;;  %v1448_v58 = vld [vmem:[%s1210_s25 + $0x70] sm:$0xff]  ;;  %v1460_v13 = vld [vmem:[%s1210_s25 + $0x78] sm:$0xff] }
  0x4e   : > { %2361 = vst [vmem:[#allocation20_spill] sm:$0xff] %v1436_v44  ;;  %v1470_v17 = vld [vmem:[%s1210_s25 + $0x90] sm:$0xff] }
  0x4f   : > { %v410_v22 = vadd.f32 %v409_v62, %v331_v52  ;;  %v447_v34 = vadd.f32 %v446_v12, %v332_v56  ;;  %v1443_v52 = vld [vmem:[%s1210_s25 + $0x2a0] sm:$0xff]  ;;  %2363 = vst [vmem:[#allocation22_spill] sm:$0xff] %v1448_v58  ;;  %v274_v62 = vmul.f32 %v1420_v26, %v1420_v26  ;;  %v1455_v12 = vld [vmem:[%s1210_s25 + $0x2a8] sm:$0xff]  ;;  %v469_v59 = vadd.f32 %v273_v49, %v269_v47 }
  0x50   : > { %2362 = vst [vmem:[#allocation21_spill] sm:$0xff] %v1443_v52 }
  0x51   : > { %v411_v43 = vadd.f32 %v410_v22, %v335_v61  ;;  %v448_v56 = vadd.f32 %v447_v34, %v336_v7  ;;  %v270_v61 = vmul.f32 %v1417_v25, %v1417_v25  ;;  %2364 = vst [vmem:[#allocation23_spill] sm:$0xff] %v1455_v12  ;;  %v347_v22 = vmul.f32 %v1423_v29, %v1423_v29  ;;  %v1465_v34 = vld [vmem:[%s1210_s25 + $0x2c0] sm:$0xff] }
  0x52   : > { %2365 = vst [vmem:[#allocation24_spill] sm:$0xff] %v1460_v13  ;;  %v277_v7 = vmul.f32 %v1428_v35, %v1428_v35  ;;  %v348_v25 = vmul.f32 %v1431_v38, %v1431_v38  ;;  %v1480_v35 = vld [vmem:[%s1210_s25 + $0x98] sm:$0xff]  ;;  %v281_v38 = vmul.f32 %v1448_v58, %v1448_v58  ;;  %v355_v47 = vmul.f32 %v1465_v34, %v1465_v34 }
  0x53   : > { %v412_v16 = vadd.f32 %v411_v43, %v339_v20  ;;  %2366 = vst [vmem:[#allocation25_spill] sm:$0xff] %v1465_v34  ;;  %v449_v26 = vadd.f32 %v448_v56, %v340_v31  ;;  %v1475_v20 = vld [vmem:[%s1210_s25 + $0x2c8] sm:$0xff]  ;;  %v351_v43 = vmul.f32 %v1443_v52, %v1443_v52  ;;  %v1485_v31 = vld [vmem:[%s1210_s25 + $0x2e0] sm:$0xff]  ;;  %v352_v56 = vmul.f32 %v1455_v12, %v1455_v12  ;;  %v1500_v58 = vld [vmem:[%s1210_s25 + $0xb8] sm:$0xff] }
  0x54   : > { %2367 = vst [vmem:[#allocation26_spill] sm:$0xff] %v1470_v17  ;;  %v1495_v52 = vld [vmem:[%s1210_s25 + $0x2e8] sm:$0xff]  ;;  %v1505_v12 = vld [vmem:[%s1210_s25 + $0x300] sm:$0xff] }
  0x55   : > { %2368 = vst [vmem:[#allocation27_spill] sm:$0xff] %v1475_v20  ;;  %v413_v29 = vadd.f32 %v412_v16, %v343_v40  ;;  %v450_v44 = vadd.f32 %v449_v26, %v344_v53  ;;  %v282_v16 = vmul.f32 %v1460_v13, %v1460_v13  ;;  %v506_v40 = vadd.f32 %v274_v62, %v270_v61  ;;  %v1510_v13 = vld [vmem:[%s1210_s25 + $0xd0] sm:$0xff]  ;;  %v1515_v34 = vld [vmem:[%s1210_s25 + $0x308] sm:$0xff] }
  0x56   : > { %2369 = vst [vmem:[#allocation28_spill] sm:$0xff] %v1480_v35  ;;  %v285_v26 = vmul.f32 %v1470_v17, %v1470_v17  ;;  %v470_v53 = vadd.f32 %v469_v59, %v277_v7  ;;  %v356_v61 = vmul.f32 %v1475_v20, %v1475_v20  ;;  %v359_v59 = vmul.f32 %v1485_v31, %v1485_v31  ;;  %v1520_v17 = vld [vmem:[%s1210_s25 + $0xd8] sm:$0xff]  ;;  %v1525_v20 = vld [vmem:[%s1210_s25 + $0x320] sm:$0xff] }
  0x57   : > { %2370 = vst [vmem:[#allocation29_spill] sm:$0xff] %v1485_v31  ;;  %v414_v49 = vadd.f32 %v413_v29, %v347_v22  ;;  %v451_v62 = vadd.f32 %v450_v44, %v348_v25  ;;  %v286_v29 = vmul.f32 %v1480_v35, %v1480_v35  ;;  %v507_v22 = vadd.f32 %v506_v40, %v278_v6  ;;  %v1530_v35 = vld [vmem:[%s1210_s25 + $0xf0] sm:$0xff]  ;;  %v1535_v31 = vld [vmem:[%s1210_s25 + $0x328] sm:$0xff] }
  0x58   : > { %2371 = vst [vmem:[#allocation30_spill] sm:$0xff] %v1490_v55  ;;  %v289_v25 = vmul.f32 %v1490_v55, %v1490_v55  ;;  %v471_v44 = vadd.f32 %v470_v53, %v281_v38  ;;  %v360_v6 = vmul.f32 %v1495_v52, %v1495_v52  ;;  %v363_v38 = vmul.f32 %v1505_v12, %v1505_v12  ;;  %v1540_v55 = vld [vmem:[%s1210_s25 + $0xf8] sm:$0xff] }
  0x59   : > { %2372 = vst [vmem:[#allocation31_spill] sm:$0xff] %v1495_v52  ;;  %v415_v7 = vadd.f32 %v414_v49, %v351_v43  ;;  %v452_v40 = vadd.f32 %v451_v62, %v352_v56  ;;  %v290_v43 = vmul.f32 %v1500_v58, %v1500_v58  ;;  %v508_v49 = vadd.f32 %v507_v22, %v282_v16  ;;  %v1545_v52 = vld [vmem:[%s1210_s25 + $0x340] sm:$0xff] }
  0x5a   : > { %2373 = vst [vmem:[#allocation32_spill] sm:$0xff] %v1500_v58  ;;  %v293_v56 = vmul.f32 %v1510_v13, %v1510_v13  ;;  %v472_v62 = vadd.f32 %v471_v44, %v285_v26  ;;  %v364_v16 = vmul.f32 %v1515_v34, %v1515_v34  ;;  %v1550_v58 = vld [vmem:[%s1210_s25 + $0x110] sm:$0xff]  ;;  %v367_v26 = vmul.f32 %v1525_v20, %v1525_v20 }
  0x5b   : > { %2374 = vst [vmem:[#allocation33_spill] sm:$0xff] %v1505_v12  ;;  %v416_v53 = vadd.f32 %v415_v7, %v355_v47  ;;  %v453_v22 = vadd.f32 %v452_v40, %v356_v61  ;;  %v294_v47 = vmul.f32 %v1520_v17, %v1520_v17  ;;  %v509_v7 = vadd.f32 %v508_v49, %v286_v29  ;;  %v1555_v12 = vld [vmem:[%s1210_s25 + $0x348] sm:$0xff] }
  0x5c   : > { %2375 = vst [vmem:[#allocation34_spill] sm:$0xff] %v1510_v13  ;;  %v1560_v13 = vld [vmem:[%s1210_s25 + $0x118] sm:$0xff]  ;;  %v297_v61 = vmul.f32 %v1530_v35, %v1530_v35  ;;  %v473_v40 = vadd.f32 %v472_v62, %v289_v25  ;;  %v368_v29 = vmul.f32 %v1535_v31, %v1535_v31  ;;  %v371_v25 = vmul.f32 %v1545_v52, %v1545_v52 }
  0x5d   : > { %2376 = vst [vmem:[#allocation35_spill] sm:$0xff] %v1515_v34  ;;  %v417_v44 = vadd.f32 %v416_v53, %v359_v59  ;;  %v1565_v34 = vld [vmem:[%s1210_s25 + $0x360] sm:$0xff]  ;;  %v454_v49 = vadd.f32 %v453_v22, %v360_v6  ;;  %v298_v59 = vmul.f32 %v1540_v55, %v1540_v55  ;;  %v510_v53 = vadd.f32 %v509_v7, %v290_v43 }
  0x5e   : > { %2377 = vst [vmem:[#allocation36_spill] sm:$0xff] %v1520_v17  ;;  %v1570_v17 = vld [vmem:[%s1210_s25 + $0x130] sm:$0xff]  ;;  %v301_v6 = vmul.f32 %v1550_v58, %v1550_v58  ;;  %v474_v22 = vadd.f32 %v473_v40, %v293_v56  ;;  %v372_v43 = vmul.f32 %v1555_v12, %v1555_v12  ;;  %v375_v56 = vmul.f32 %v1565_v34, %v1565_v34 }
  0x5f   : > { %2378 = vst [vmem:[#allocation37_spill] sm:$0xff] %v1525_v20  ;;  %v1575_v20 = vld [vmem:[%s1210_s25 + $0x368] sm:$0xff]  ;;  %v418_v62 = vadd.f32 %v417_v44, %v363_v38  ;;  %v455_v7 = vadd.f32 %v454_v49, %v364_v16  ;;  %v302_v38 = vmul.f32 %v1560_v13, %v1560_v13  ;;  %v511_v44 = vadd.f32 %v510_v53, %v294_v47 }
  0x60   : > { %2379 = vst [vmem:[#allocation38_spill] sm:$0xff] %v1530_v35  ;;  %v1580_v35 = vld [vmem:[%s1210_s25 + $0x138] sm:$0xff]  ;;  %v305_v16 = vmul.f32 %v1570_v17, %v1570_v17  ;;  %v475_v49 = vadd.f32 %v474_v22, %v297_v61  ;;  %v376_v47 = vmul.f32 %v1575_v20, %v1575_v20 }
  0x61   : > { %2380 = vst [vmem:[#allocation39_spill] sm:$0xff] %v1535_v31  ;;  %v1585_v31 = vld [vmem:[%s1210_s25 + $0x380] sm:$0xff]  ;;  %v419_v40 = vadd.f32 %v418_v62, %v367_v26  ;;  %v456_v53 = vadd.f32 %v455_v7, %v368_v29  ;;  %v306_v26 = vmul.f32 %v1580_v35, %v1580_v35  ;;  %v512_v62 = vadd.f32 %v511_v44, %v298_v59 }
  0x62   : > { %2381 = vst [vmem:[#allocation40_spill] sm:$0xff] %v1540_v55  ;;  %v1590_v55 = vld [vmem:[%s1210_s25 + $0x150] sm:$0xff]  ;;  %v379_v61 = vmul.f32 %v1585_v31, %v1585_v31  ;;  %v476_v7 = vadd.f32 %v475_v49, %v301_v6 }
  0x63   : > { %2382 = vst [vmem:[#allocation41_spill] sm:$0xff] %v1545_v52  ;;  %v1595_v52 = vld [vmem:[%s1210_s25 + $0x388] sm:$0xff]  ;;  %v420_v22 = vadd.f32 %v419_v40, %v371_v25  ;;  %v309_v29 = vmul.f32 %v1590_v55, %v1590_v55  ;;  %v457_v44 = vadd.f32 %v456_v53, %v372_v43  ;;  %v513_v40 = vadd.f32 %v512_v62, %v302_v38  ;;  %v1645_v53 = vld [vmem:[%s1210_s25 + $0x3e0] sm:$0xff]  ;;  %v1650_v62 = vld [vmem:[%s1210_s25 + $0x1b0] sm:$0xff] }
  0x64   : > { %2383 = vst [vmem:[#allocation42_spill] sm:$0xff] %v1550_v58  ;;  %v1600_v58 = vld [vmem:[%s1210_s25 + $0x158] sm:$0xff]  ;;  %v380_v59 = vmul.f32 %v1595_v52, %v1595_v52  ;;  %v477_v43 = vadd.f32 %v476_v7, %v305_v16 }
  0x65   : > { %2384 = vst [vmem:[#allocation43_spill] sm:$0xff] %v1555_v12  ;;  %v1605_v12 = vld [vmem:[%s1210_s25 + $0x3a0] sm:$0xff]  ;;  %v310_v25 = vmul.f32 %v1600_v58, %v1600_v58  ;;  %v421_v49 = vadd.f32 %v420_v22, %v375_v56  ;;  %v458_v38 = vadd.f32 %v457_v44, %v376_v47  ;;  %v514_v56 = vadd.f32 %v513_v40, %v306_v26  ;;  %v1655_v22 = vld [vmem:[%s1210_s25 + $0x3e8] sm:$0xff]  ;;  %v1660_v16 = vld [vmem:[%s1210_s25 + $0x1b8] sm:$0xff] }
  0x66   : > { %2385 = vst [vmem:[#allocation44_spill] sm:$0xff] %v1560_v13  ;;  %v1610_v13 = vld [vmem:[%s1210_s25 + $0x170] sm:$0xff]  ;;  %v383_v6 = vmul.f32 %v1605_v12, %v1605_v12  ;;  %v478_v47 = vadd.f32 %v477_v43, %v309_v29  ;;  %v321_v29 = vmul.f32 %v1650_v62, %v1650_v62 }
  0x67   : > { %2386 = vst [vmem:[#allocation45_spill] sm:$0xff] %v1565_v34  ;;  %v1615_v34 = vld [vmem:[%s1210_s25 + $0x3a8] sm:$0xff]  ;;  %v422_v50 = vadd.f32 %v421_v49, %v379_v61  ;;  %v515_v40 = vadd.f32 %v514_v56, %v310_v25  ;;  %v391_v61 = vmul.f32 %v1645_v53, %v1645_v53  ;;  %v322_v25 = vmul.f32 %v1660_v16, %v1660_v16 }
  0x68   : > { %2387 = vst [vmem:[#allocation46_spill] sm:$0xff] %v1570_v17  ;;  %v1620_v17 = vld [vmem:[%s1210_s25 + $0x178] sm:$0xff] }
  0x69   : > { %2388 = vst [vmem:[#allocation47_spill] sm:$0xff] %v1575_v20  ;;  %v1625_v20 = vld [vmem:[%s1210_s25 + $0x3c0] sm:$0xff]  ;;  %v423_v49 = vadd.f32 %v422_v50, %v383_v6  ;;  %v1686_v50 = vld [vmem:[%s1210_s25 + $0x1f8] sm:$0xff] }
  0x6a   : > { %2389 = vst [vmem:[#allocation48_spill] sm:$0xff] %v1580_v35  ;;  %v1630_v35 = vld [vmem:[%s1210_s25 + $0x190] sm:$0xff] }
  0x6b   : > { %2390 = vst [vmem:[#allocation49_spill] sm:$0xff] %v1585_v31  ;;  %v1635_v31 = vld [vmem:[%s1210_s25 + $0x3c8] sm:$0xff]  ;;  %v317_v7 = vmul.f32 %v1630_v35, %v1630_v35 }
  0x6c   : > { %2391 = vst [vmem:[#allocation50_spill] sm:$0xff] %v1590_v55  ;;  %v1640_v55 = vld [vmem:[%s1210_s25 + $0x198] sm:$0xff]  ;;  %v388_v44 = vmul.f32 %v1635_v31, %v1635_v31 }
  0x6d   : > { %2392 = vst [vmem:[#allocation51_spill] sm:$0xff] %v1595_v52  ;;  %v313_v52 = vmul.f32 %v1610_v13, %v1610_v13  ;;  %v318_v26 = vmul.f32 %v1640_v55, %v1640_v55 }
  0x6e   : > { %2393 = vst [vmem:[#allocation52_spill] sm:$0xff] %v1600_v58  ;;  %v384_v58 = vmul.f32 %v1615_v34, %v1615_v34 }
  0x6f   : > { %2394 = vst [vmem:[#allocation53_spill] sm:$0xff] %v1605_v12  ;;  %v314_v12 = vmul.f32 %v1620_v17, %v1620_v17  ;;  %v479_v43 = vadd.f32 %v478_v47, %v313_v52  ;;  %v1691_v47 = vld [vmem:[%s1210_s25 + $0x210] sm:$0xff] }
  0x70   : > { %2395 = vst [vmem:[#allocation54_spill] sm:$0xff] %v1610_v13  ;;  %v387_v13 = vmul.f32 %v1625_v20, %v1625_v20 }
  0x71   : > { %2396 = vst [vmem:[#allocation55_spill] sm:$0xff] %v1615_v34  ;;  %v459_v34 = vadd.f32 %v458_v38, %v380_v59  ;;  %v392_v59 = vmul.f32 %v1655_v22, %v1655_v22  ;;  %v516_v56 = vadd.f32 %v515_v40, %v314_v12 }
  0x72   : > { %2397 = vst [vmem:[#allocation56_spill] sm:$0xff] %v1620_v17  ;;  %v1667_v17 = vld [vmem:[%s1210_s25 + $0x1d0] sm:$0xff] }
  0x73   : > { %2398 = vst [vmem:[#allocation57_spill] sm:$0xff] %v1625_v20  ;;  %v1674_v20 = vld [vmem:[%s1210_s25 + $0x1d8] sm:$0xff]  ;;  %v460_v38 = vadd.f32 %v459_v34, %v384_v58  ;;  %v325_v6 = vmul.f32 %v1667_v17, %v1667_v17  ;;  %v517_v34 = vadd.f32 %v516_v56, %v318_v26  ;;  %v1711_v56 = vld [vmem:[%s1210_s25 + $0x250] sm:$0xff] }
  0x74   : > { %2399 = vst [vmem:[#allocation58_spill] sm:$0xff] %v1635_v31  ;;  %v1681_v31 = vld [vmem:[%s1210_s25 + $0x1f0] sm:$0xff]  ;;  %v326_v58 = vmul.f32 %v1674_v20, %v1674_v20 }
  0x75   : > { %2400 = vst [vmem:[#allocation59_spill] sm:$0xff] %v1640_v55  ;;  %v461_v52 = vadd.f32 %v460_v38, %v388_v44  ;;  %v1696_v55 = vld [vmem:[%s1210_s25 + $0x218] sm:$0xff]  ;;  %v518_v44 = vadd.f32 %v517_v34, %v322_v25 }
  0x76   : > { %2401 = vst [vmem:[#allocation60_spill] sm:$0xff] %v1645_v53  ;;  %v424_v53 = vadd.f32 %v423_v49, %v387_v13  ;;  %v329_v13 = vmul.f32 %v1681_v31, %v1681_v31  ;;  %v1701_v49 = vld [vmem:[%s1210_s25 + $0x230] sm:$0xff]  ;;  %v1706_v38 = vld [vmem:[%s1210_s25 + $0x238] sm:$0xff] }
  0x77   : > { %2402 = vst [vmem:[#allocation61_spill] sm:$0xff] %v1650_v62  ;;  %v480_v62 = vadd.f32 %v479_v43, %v317_v7  ;;  %v462_v40 = vadd.f32 %v461_v52, %v392_v59  ;;  %v330_v7 = vmul.f32 %v1686_v50, %v1686_v50  ;;  %v1716_v52 = vld [vmem:[%s1210_s25 + $0x258] sm:$0xff]  ;;  %v337_v25 = vmul.f32 %v1701_v49, %v1701_v49 }
  0x78   : > { %2403 = vst [vmem:[#allocation62_spill] sm:$0xff] %v1655_v22  ;;  %v425_v22 = vadd.f32 %v424_v53, %v391_v61  ;;  %v333_v53 = vmul.f32 %v1691_v47, %v1691_v47 }
  0x79   : > { %2404 = vst [vmem:[#allocation63_spill] sm:$0xff] %v1667_v17  ;;  %v481_v12 = vadd.f32 %v480_v62, %v321_v29  ;;  %v463_v61 = vrot.slane %v462_v40, 4  ;;  %v334_v62 = vmul.f32 %v1696_v55, %v1696_v55  ;;  %v519_v29 = vadd.f32 %v518_v44, %v326_v58 }
  0x7a   : > { %2405 = vst [vmem:[#allocation64_spill] sm:$0xff] %v1674_v20  ;;  %v426_v43 = vrot.slane %v425_v22, 4  ;;  %v1726_v20 = vld [vmem:[%s1210_s25 + $0x278] sm:$0xff] }
  0x7b   : > { %2406 = vst [vmem:[#allocation65_spill] sm:$0xff] %v1681_v31  ;;  %v482_v26 = vadd.f32 %v481_v12, %v325_v6  ;;  %v1721_v31 = vld [vmem:[%s1210_s25 + $0x270] sm:$0xff]  ;;  %v338_v6 = vmul.f32 %v1706_v38, %v1706_v38  ;;  %v520_v12 = vadd.f32 %v519_v29, %v330_v7 }
  0x7c   : > { %2407 = vst [vmem:[#allocation66_spill] sm:$0xff] %v1686_v50  ;;  %v427_v59 = vadd.f32 %v426_v43, %v425_v22  ;;  %v464_v50 = vadd.f32 %v463_v61, %v462_v40  ;;  %v341_v22 = vmul.f32 %v1711_v56, %v1711_v56  ;;  %v1731_v43 = vld [vmem:[%s1210_s25 + $0x290] sm:$0xff]  ;;  %v1736_v61 = vld [vmem:[%s1210_s25 + $0x298] sm:$0xff]  ;;  %v345_v7 = vmul.f32 %v1721_v31, %v1721_v31 }
  0x7d   : > { %2408 = vst [vmem:[#allocation67_spill] sm:$0xff] %v1691_v47  ;;  %v483_v34 = vadd.f32 %v482_v26, %v329_v13  ;;  %v342_v13 = vmul.f32 %v1716_v52, %v1716_v52  ;;  %v521_v40 = vadd.f32 %v520_v12, %v334_v62  ;;  %v1751_v12 = vld [vmem:[%s1210_s25 + $0x2d0] sm:$0xff] }
  0x7e   : > { %2409 = vst [vmem:[#allocation68_spill] sm:$0xff] %v1696_v55  ;;  %v428_v47 = vrot.slane %v427_v59, 2  ;;  %v465_v44 = vrot.slane %v464_v50, 2  ;;  %v1746_v55 = vld [vmem:[%s1210_s25 + $0x2b8] sm:$0xff] }
  0x7f   : > { %2410 = vst [vmem:[#allocation69_spill] sm:$0xff] %v1701_v49  ;;  %v484_v58 = vadd.f32 %v483_v34, %v333_v53  ;;  %v1741_v49 = vld [vmem:[%s1210_s25 + $0x2b0] sm:$0xff]  ;;  %v346_v53 = vmul.f32 %v1726_v20, %v1726_v20  ;;  %v522_v34 = vadd.f32 %v521_v40, %v338_v6 }
  0x80   : > { %2411 = vst [vmem:[#allocation70_spill] sm:$0xff] %v1706_v38  ;;  %v429_v26 = vadd.f32 %v428_v47, %v427_v59  ;;  %v466_v38 = vadd.f32 %v465_v44, %v464_v50  ;;  %v349_v47 = vmul.f32 %v1731_v43, %v1731_v43  ;;  %v350_v50 = vmul.f32 %v1736_v61, %v1736_v61  ;;  %v1756_v44 = vld [vmem:[%s1210_s25 + $0x2d8] sm:$0xff] }
  0x81   : > { %2412 = vst [vmem:[#allocation71_spill] sm:$0xff] %v1711_v56  ;;  %v485_v29 = vadd.f32 %v484_v58, %v337_v25  ;;  %v523_v25 = vadd.f32 %v522_v34, %v342_v13  ;;  %v353_v6 = vmul.f32 %v1741_v49, %v1741_v49  ;;  %v1768_v13 = vld [vmem:[%s1210_s25 + $0x2f8] sm:$0xff] }
  0x82   : > { %2413 = vst [vmem:[#allocation72_spill] sm:$0xff] %v1716_v52  ;;  %v430_v56 = vrot.slane %v429_v26, 1  ;;  %v467_v59 = vrot.slane %v466_v38, 1 }
  0x83   : > { %2414 = vst [vmem:[#allocation73_spill] sm:$0xff] %v1721_v31  ;;  %v486_v62 = vadd.f32 %v485_v29, %v341_v22  ;;  %v1761_v31 = vld [vmem:[%s1210_s25 + $0x2f0] sm:$0xff]  ;;  %v354_v22 = vmul.f32 %v1746_v55, %v1746_v55  ;;  %v524_v29 = vadd.f32 %v523_v25, %v346_v53  ;;  %v1781_v53 = vld [vmem:[%s1210_s25 + $0x318] sm:$0xff] }
  0x84   : > { %2415 = vst [vmem:[#allocation74_spill] sm:$0xff] %v1726_v20  ;;  %v431_v58 = vadd.f32 %v430_v56, %v429_v26  ;;  %v468_v20 = vadd.f32 %v467_v59, %v466_v38  ;;  %v357_v56 = vmul.f32 %v1751_v12, %v1751_v12  ;;  %v1775_v38 = vld [vmem:[%s1210_s25 + $0x310] sm:$0xff]  ;;  %v361_v59 = vmul.f32 %v1761_v31, %v1761_v31 }
  0x85   : > { %2416 = vst [vmem:[#allocation75_spill] sm:$0xff] %v1731_v43  ;;  %v487_v40 = vadd.f32 %v486_v62, %v345_v7  ;;  %v358_v7 = vmul.f32 %v1756_v44, %v1756_v44  ;;  %v525_v62 = vadd.f32 %v524_v29, %v350_v50  ;;  %v1792_v50 = vld [vmem:[%s1210_s25 + $0x338] sm:$0xff] }
  0x86   : > { %2417 = vst [vmem:[#allocation76_spill] sm:$0xff] %v1736_v61  ;;  %v1765_v43 = vmax.f32 %v431_v58, 1e-24  ;;  %v1772_v34 = vmax.f32 %v468_v20, 1e-24  ;;  %v1787_v20 = vld [vmem:[%s1210_s25 + $0x330] sm:$0xff] }
  0x87   : > { %2418 = vst [vmem:[#allocation77_spill] sm:$0xff] %v1741_v49  ;;  %v488_v26 = vadd.f32 %v487_v40, %v349_v47  ;;  %v362_v47 = vmul.f32 %v1768_v13, %v1768_v13  ;;  %v526_v58 = vadd.f32 %v525_v62, %v354_v22  ;;  %v365_v40 = vmul.f32 %v1775_v38, %v1775_v38  ;;  %v1807_v62 = vld [vmem:[%s1210_s25 + $0x370] sm:$0xff] }
  0x88   : > { %2419 = vst [vmem:[#allocation78_spill] sm:$0xff] %v1746_v55  ;;  %1000 = vrsqrt.f32 %v1765_v43  ;;  %v1815_v55 = vld [vmem:[%s1210_s25 + $0x390] sm:$0xff]  ;;  %v377_v49 = vmul.f32 %v1807_v62, %v1807_v62  ;;  %vm553_vm0 = vweird.f32 %v1765_v43  ;;  %vm563_vm2 = vweird.f32 %v1772_v34 }
  0x89   : > { %2420 = vst [vmem:[#allocation79_spill] sm:$0xff] %v1751_v12  ;;  %v489_v25 = vadd.f32 %v488_v26, %v353_v6  ;;  %1002 = vrsqrt.f32 %v1772_v34  ;;  %v366_v6 = vmul.f32 %v1781_v53, %v1781_v53  ;;  %v527_v26 = vadd.f32 %v526_v58, %v358_v7  ;;  %v1812_v12 = vld [vmem:[%s1210_s25 + $0x378] sm:$0xff] }
  0x8a   : > { %2421 = vst [vmem:[#allocation80_spill] sm:$0xff] %v1756_v44  ;;  %v1797_v44 = vld [vmem:[%s1210_s25 + $0x350] sm:$0xff] }
  0x8b   : > { %2422 = vst [vmem:[#allocation81_spill] sm:$0xff] %v1761_v31  ;;  %v490_v29 = vadd.f32 %v489_v25, %v357_v56  ;;  %v1802_v31 = vld [vmem:[%s1210_s25 + $0x358] sm:$0xff]  ;;  %v528_v56 = vadd.f32 %v527_v26, %v362_v47  ;;  %v373_v7 = vmul.f32 %v1797_v44, %v1797_v44 }
  0x8c   : > { %2423 = vst [vmem:[#allocation82_spill] sm:$0xff] %v1768_v13  ;;  %v369_v13 = vmul.f32 %v1787_v20, %v1787_v20  ;;  %v374_v47 = vmul.f32 %v1802_v31, %v1802_v31 }
  0x8d   : > { %2424 = vst [vmem:[#allocation83_spill] sm:$0xff] %v1775_v38  ;;  %v491_v22 = vadd.f32 %v490_v29, %v361_v59  ;;  %v370_v38 = vmul.f32 %v1792_v50, %v1792_v50  ;;  %v1821_v59 = vld [vmem:[%s1210_s25 + $0x398] sm:$0xff]  ;;  %v1824_v29 = vld [vmem:[%s1210_s25 + $0x3b0] sm:$0xff]  ;;  %v529_v26 = vadd.f32 %v528_v56, %v366_v6 }
  0x8e   : > { %2425 = vst [vmem:[#allocation84_spill] sm:$0xff] %v1781_v53  ;;  %v1001_v25 = vpop.eup %1000  ;;  %v382_v6 = vmul.f32 %v1821_v59, %v1821_v59  ;;  %v385_v56 = vmul.f32 %v1824_v29, %v1824_v29 }
  0x8f   : > { %2426 = vst [vmem:[#allocation85_spill] sm:$0xff] %v1787_v20  ;;  %v492_v58 = vadd.f32 %v491_v22, %v365_v40  ;;  %v1003_v53 = vpop.eup %1002  ;;  %v548_v20 = vmul.f32 %v1001_v25, %v1765_v43  ;;  %v378_v40 = vmul.f32 %v1812_v12, %v1812_v12  ;;  %v381_v22 = vmul.f32 %v1815_v55, %v1815_v55 }
  0x90   : > { %2427 = vst [vmem:[#allocation86_spill] sm:$0xff] %v1792_v50  ;;  %v558_v50 = vmul.f32 %v1003_v53, %v1772_v34  ;;  %v530_v52 = vadd.f32 %v529_v26, %v370_v38  ;;  %vm554_vm1 = vweird.f32 %v1001_v25  ;;  %vm564_vm3 = vweird.f32 %v1003_v53 }
  0x91   : > { %2428 = vst [vmem:[#allocation87_spill] sm:$0xff] %v1797_v44  ;;  %v493_v44 = vadd.f32 %v492_v58, %v369_v13  ;;  %v549_v61 = vmul.f32 %v1001_v25, %v548_v20  ;;  %v1844_v58 = vld [vmem:[%s1210_s25 + $0x3d0] sm:$0xff]  ;;  %vm555_vm4 = vmor %vm553_vm0, %vm554_vm1 }
  0x92   : > { %2429 = vst [vmem:[#allocation88_spill] sm:$0xff] %v1802_v31  ;;  %v559_v17 = vmul.f32 %v1003_v53, %v558_v50  ;;  %v1836_v31 = vld [vmem:[%s1210_s25 + $0x3b8] sm:$0xff]  ;;  %vm565_vm5 = vmor %vm563_vm2, %vm564_vm3 }
  0x93   : > { %2430 = vst [vmem:[#allocation89_spill] sm:$0xff] %v1812_v12  ;;  %v494_v13 = vadd.f32 %v493_v44, %v373_v7  ;;  %v550_v20 = vmul.f32 0.5, %v549_v61  ;;  %v1848_v50 = vld [vmem:[%s1210_s25 + $0x3d8] sm:$0xff]  ;;  %v1851_v12 = vld [vmem:[%s1210_s25 + $0x3f0] sm:$0xff]  ;;  %v386_v61 = vmul.f32 %v1836_v31, %v1836_v31 }
  0x94   : > { %2431 = vst [vmem:[#allocation90_spill] sm:$0xff] %v1815_v55  ;;  %v531_v55 = vadd.f32 %v530_v52, %v374_v47  ;;  %v560_v38 = vmul.f32 0.5, %v559_v17  ;;  %v1856_v7 = vld [vmem:[%s1210_s25 + $0x3f8] sm:$0xff]  ;;  %v389_v17 = vmul.f32 %v1844_v58, %v1844_v58 }
  0x95   : > { %2432 = vst [vmem:[#allocation91_spill] sm:$0xff] %v1821_v59  ;;  %v495_v26 = vadd.f32 %v494_v13, %v377_v49  ;;  %v551_v59 = vsub.f32 1.5, %v550_v20  ;;  %v390_v49 = vmul.f32 %v1848_v50, %v1848_v50  ;;  %v393_v20 = vmul.f32 %v1851_v12, %v1851_v12 }
  0x96   : > { %2433 = vst [vmem:[#allocation92_spill] sm:$0xff] %v1836_v31  ;;  %v532_v44 = vadd.f32 %v531_v55, %v378_v40  ;;  %v561_v43 = vsub.f32 1.5, %v560_v38  ;;  %v394_v40 = vmul.f32 %v1856_v7, %v1856_v7 }
  0x97   : > { %2434 = vst [vmem:[#allocation93_spill] sm:$0xff] %v1844_v58  ;;  %v496_v52 = vadd.f32 %v495_v26, %v381_v22  ;;  %v552_v34 = vmul.f32 %v1001_v25, %v551_v59 }
  0x98   : > { %v533_v47 = vadd.f32 %v532_v44, %v382_v6  ;;  %v562_v13 = vmul.f32 %v1003_v53, %v561_v43 }
  0x99   : > { %v497_v31 = vadd.f32 %v496_v52, %v385_v56  ;;  %v1865_v55 = vsel %vm555_vm4, %v1001_v25, %v552_v34 }
  0x9a   : > { %v534_v38 = vadd.f32 %v533_v47, %v386_v61  ;;  %v1869_v58 = vsel %vm565_vm5, %v1003_v53, %v562_v13  ;;  %v587_v59 = vmul.f32 %v1865_v55, %v1217_v0  ;;  %v591_v53 = vmul.f32 %v1865_v55, %v1223_v2 }
  0x9b   : > { %v498_v22 = vadd.f32 %v497_v31, %v389_v17  ;;  %v588_v6 = vmul.f32 %v1869_v58, %v1220_v1  ;;  %v592_v0 = vmul.f32 %v1869_v58, %v1226_v3  ;;  %v595_v1 = vmul.f32 %v1865_v55, %v1229_v4 }
  0x9c   : > { %v535_v26 = vadd.f32 %v534_v38, %v390_v49  ;;  %v596_v61 = vmul.f32 %v1869_v58, %v1232_v5  ;;  %v599_v49 = vmul.f32 %v1865_v55, %v1241_v9  ;;  %v600_v47 = vmul.f32 %v1869_v58, %v1244_v10 }
  0x9d   : > { %v499_v44 = vadd.f32 %v498_v22, %v393_v20  ;;  %v715_v43 = vpack.c.bf16 %v588_v6, %v587_v59  ;;  %v717_v34 = vpack.c.bf16 %v592_v0, %v591_v53  ;;  %v603_v3 = vmul.f32 %v1865_v55, %v1247_v11 }
  0x9e   : > { %v536_v56 = vadd.f32 %v535_v26, %v394_v40  ;;  %v719_v13 = vpack.c.bf16 %v596_v61, %v595_v1  ;;  %v604_v4 = vmul.f32 %v1869_v58, %v1256_v15  ;;  %v721_v5 = vpack.c.bf16 %v600_v47, %v599_v49 }
  0x9f   : > { %v500_v52 = vrot.slane %v499_v44, 4  ;;  %779 = vst [vmem:[%s1875_s26] sm:$0xff] %v715_v43  ;;  %v607_v40 = vmul.f32 %v1865_v55, %v1261_v18  ;;  %v608_v9 = vmul.f32 %v1869_v58, %v1266_v21  ;;  %v611_v11 = vmul.f32 %v1865_v55, %v1271_v24 }
  0xa0   : > { %v537_v25 = vrot.slane %v536_v56, 4  ;;  %781 = vst [vmem:[%s1875_s26 + $0x10] sm:$0xff] %v717_v34  ;;  %v723_v38 = vpack.c.bf16 %v604_v4, %v603_v3  ;;  %v612_v15 = vmul.f32 %v1869_v58, %v1276_v27  ;;  %v615_v18 = vmul.f32 %v1865_v55, %v1281_v30  ;;  %v2436_v4 = vld [vmem:[#allocation9_spill] sm:$0xff] }
  0xa1   : > { %v501_v31 = vadd.f32 %v500_v52, %v499_v44  ;;  %783 = vst [vmem:[%s1875_s26 + $0x20] sm:$0xff] %v719_v13  ;;  %v725_v22 = vpack.c.bf16 %v608_v9, %v607_v40  ;;  %v616_v21 = vmul.f32 %v1869_v58, %v1286_v33  ;;  %v619_v24 = vmul.f32 %v1865_v55, %v1291_v36 }
  0xa2   : > { %v538_v17 = vadd.f32 %v537_v25, %v536_v56  ;;  %785 = vst [vmem:[%s1875_s26 + $0x30] sm:$0xff] %v721_v5  ;;  %v727_v26 = vpack.c.bf16 %v612_v15, %v611_v11  ;;  %v620_v27 = vmul.f32 %v1869_v58, %v1296_v39  ;;  %v623_v30 = vmul.f32 %v1865_v55, %v1301_v42  ;;  %v2438_v5 = vld [vmem:[#allocation11_spill] sm:$0xff]  ;;  %v2440_v11 = vld [vmem:[#allocation17_spill] sm:$0xff] }
  0xa3   : > { %v502_v2 = vrot.slane %v501_v31, 2  ;;  %787 = vst [vmem:[%s1875_s26 + $0x40] sm:$0xff] %v723_v38  ;;  %v729_v43 = vpack.c.bf16 %v616_v21, %v615_v18  ;;  %v624_v33 = vmul.f32 %v1869_v58, %v1306_v45  ;;  %v627_v36 = vmul.f32 %v1865_v55, %v1311_v48 }
  0xa4   : > { %v539_v20 = vrot.slane %v538_v17, 2  ;;  %789 = vst [vmem:[%s1875_s26 + $0x50] sm:$0xff] %v725_v22  ;;  %v731_v52 = vpack.c.bf16 %v620_v27, %v619_v24  ;;  %v628_v39 = vmul.f32 %v1869_v58, %v1316_v51  ;;  %v631_v42 = vmul.f32 %v1865_v55, %v1321_v54 }
  0xa5   : > { %v503_v10 = vadd.f32 %v502_v2, %v501_v31  ;;  %791 = vst [vmem:[%s1875_s26 + $0x60] sm:$0xff] %v727_v26  ;;  %v733_v53 = vpack.c.bf16 %v624_v33, %v623_v30  ;;  %v632_v45 = vmul.f32 %v1869_v58, %v1326_v57  ;;  %v635_v48 = vmul.f32 %v1865_v55, %v1331_v60  ;;  %v2442_v26 = vld [vmem:[#allocation21_spill] sm:$0xff] }
  0xa6   : > { %v540_v59 = vadd.f32 %v539_v20, %v538_v17  ;;  %793 = vst [vmem:[%s1875_s26 + $0x70] sm:$0xff] %v729_v43  ;;  %v735_v31 = vpack.c.bf16 %v628_v39, %v627_v36  ;;  %v636_v51 = vmul.f32 %v1869_v58, %v1336_v63  ;;  %v639_v54 = vmul.f32 %v1865_v55, %v1341_v8  ;;  %v2437_v20 = vld [vmem:[#allocation10_spill] sm:$0xff]  ;;  %v2443_v43 = vld [vmem:[#allocation23_spill] sm:$0xff] }
  0xa7   : > { %v504_v6 = vrot.slane %v503_v10, 1  ;;  %795 = vst [vmem:[%s1875_s26 + $0x80] sm:$0xff] %v731_v52  ;;  %v737_v61 = vpack.c.bf16 %v632_v45, %v631_v42  ;;  %v640_v57 = vmul.f32 %v1869_v58, %v1346_v14  ;;  %v643_v60 = vmul.f32 %v1865_v55, %v1351_v19  ;;  %v2445_v36 = vld [vmem:[#allocation27_spill] sm:$0xff] }
  0xa8   : > { %v541_v44 = vrot.slane %v540_v59, 1  ;;  %797 = vst [vmem:[%s1875_s26 + $0x90] sm:$0xff] %v733_v53  ;;  %v739_v17 = vpack.c.bf16 %v636_v51, %v635_v48  ;;  %v644_v34 = vmul.f32 %v1869_v58, %v1356_v23  ;;  %v647_v8 = vmul.f32 %v1865_v55, %v1361_v28  ;;  %v2435_v23 = vld [vmem:[#allocation8_spill] sm:$0xff]  ;;  %v2448_v51 = vld [vmem:[#allocation33_spill] sm:$0xff] }
  0xa9   : > { %v505_v56 = vadd.f32 %v504_v6, %v503_v10  ;;  %799 = vst [vmem:[%s1875_s26 + $0xa0] sm:$0xff] %v735_v31  ;;  %v741_v63 = vpack.c.bf16 %v640_v57, %v639_v54  ;;  %v648_v14 = vmul.f32 %v1869_v58, %v1366_v32  ;;  %v651_v49 = vmul.f32 %v1865_v55, %v1371_v37  ;;  %v2447_v31 = vld [vmem:[#allocation31_spill] sm:$0xff] }
  0xaa   : > { %v542_v25 = vadd.f32 %v541_v44, %v540_v59  ;;  %801 = vst [vmem:[%s1875_s26 + $0xb0] sm:$0xff] %v737_v61  ;;  %v652_v19 = vmul.f32 %v1869_v58, %v1376_v41  ;;  %v743_v47 = vpack.c.bf16 %v644_v34, %v643_v60  ;;  %v655_v2 = vmul.f32 %v1865_v55, %v1381_v46  ;;  %v2439_v46 = vld [vmem:[#allocation14_spill] sm:$0xff]  ;;  %v2441_v59 = vld [vmem:[#allocation19_spill] sm:$0xff] }
  0xab   : > { %v1929_v0 = vmax.f32 %v505_v56, 1e-24  ;;  %803 = vst [vmem:[%s1875_s26 + $0xc0] sm:$0xff] %v739_v17  ;;  %v656_v13 = vmul.f32 %v1869_v58, %v2435_v23  ;;  %v745_v3 = vpack.c.bf16 %v648_v14, %v647_v8  ;;  %v659_v32 = vmul.f32 %v1865_v55, %v2436_v4  ;;  %v2444_v56 = vld [vmem:[#allocation25_spill] sm:$0xff]  ;;  %v2449_v17 = vld [vmem:[#allocation35_spill] sm:$0xff] }
  0xac   : > { %v1936_v1 = vmax.f32 %v542_v25, 1e-24  ;;  %805 = vst [vmem:[%s1875_s26 + $0xd0] sm:$0xff] %v741_v63  ;;  %v747_v28 = vpack.c.bf16 %v652_v19, %v651_v49  ;;  %v660_v37 = vmul.f32 %v1869_v58, %v2437_v20  ;;  %v663_v40 = vmul.f32 %v1865_v55, %v2438_v5  ;;  %v2446_v25 = vld [vmem:[#allocation29_spill] sm:$0xff]  ;;  %v2451_v49 = vld [vmem:[#allocation39_spill] sm:$0xff] }
  0xad   : > { %1004 = vrsqrt.f32 %v1929_v0  ;;  %vm573_vm6 = vweird.f32 %v1929_v0  ;;  %807 = vst [vmem:[%s1875_s26 + $0xe0] sm:$0xff] %v743_v47  ;;  %v749_v41 = vpack.c.bf16 %v656_v13, %v655_v2  ;;  %v664_v9 = vmul.f32 %v1869_v58, %v2439_v46  ;;  %v2450_v63 = vld [vmem:[#allocation37_spill] sm:$0xff] }
  0xae   : > { %1006 = vrsqrt.f32 %v1936_v1  ;;  %vm583_vm7 = vweird.f32 %v1936_v1  ;;  %809 = vst [vmem:[%s1875_s26 + $0xf0] sm:$0xff] %v745_v3  ;;  %v751_v38 = vpack.c.bf16 %v660_v37, %v659_v32  ;;  %v667_v15 = vmul.f32 %v1865_v55, %v2440_v11  ;;  %v2452_v47 = vld [vmem:[#allocation41_spill] sm:$0xff]  ;;  %v2453_v3 = vld [vmem:[#allocation43_spill] sm:$0xff] }
  0xaf   : > { %v668_v22 = vmul.f32 %v1869_v58, %v2441_v59  ;;  %811 = vst [vmem:[%s1875_s26 + $0x100] sm:$0xff] %v747_v28  ;;  %v753_v6 = vpack.c.bf16 %v664_v9, %v663_v40  ;;  %v671_v24 = vmul.f32 %v1865_v55, %v2442_v26  ;;  %v672_v30 = vmul.f32 %v1869_v58, %v2443_v43  ;;  %v2454_v4 = vld [vmem:[#allocation45_spill] sm:$0xff]  ;;  %v2458_v26 = vld [vmem:[#allocation12_spill] sm:$0xff] }
  0xb0   : > { %813 = vst [vmem:[%s1875_s26 + $0x110] sm:$0xff] %v749_v41  ;;  %v675_v52 = vmul.f32 %v1865_v55, %v2444_v56  ;;  %v676_v39 = vmul.f32 %v1869_v58, %v2445_v36  ;;  %v679_v53 = vmul.f32 %v1865_v55, %v2446_v25  ;;  %v680_v48 = vmul.f32 %v1869_v58, %v2447_v31  ;;  %v2455_v41 = vld [vmem:[#allocation47_spill] sm:$0xff]  ;;  %v2456_v40 = vld [vmem:[#allocation49_spill] sm:$0xff]  ;;  %v2462_v56 = vld [vmem:[#allocation16_spill] sm:$0xff] }
  0xb1   : > { %v755_v44 = vpack.c.bf16 %v668_v22, %v667_v15  ;;  %815 = vst [vmem:[%s1875_s26 + $0x120] sm:$0xff] %v751_v38  ;;  %v757_v45 = vpack.c.bf16 %v672_v30, %v671_v24  ;;  %v683_v61 = vmul.f32 %v1865_v55, %v2448_v51  ;;  %v684_v60 = vmul.f32 %v1869_v58, %v2449_v17  ;;  %v2461_v30 = vld [vmem:[#allocation15_spill] sm:$0xff]  ;;  %v2464_v36 = vld [vmem:[#allocation22_spill] sm:$0xff]  ;;  %v2465_v25 = vld [vmem:[#allocation24_spill] sm:$0xff] }
  0xb2   : > { %817 = vst [vmem:[%s1875_s26 + $0x130] sm:$0xff] %v753_v6  ;;  %v759_v57 = vpack.c.bf16 %v676_v39, %v675_v52  ;;  %v687_v34 = vmul.f32 %v1865_v55, %v2450_v63  ;;  %v761_v14 = vpack.c.bf16 %v680_v48, %v679_v53  ;;  %v688_v19 = vmul.f32 %v1869_v58, %v2451_v49  ;;  %v2463_v52 = vld [vmem:[#allocation20_spill] sm:$0xff]  ;;  %v2468_v51 = vld [vmem:[#allocation30_spill] sm:$0xff] }
  0xb3   : > { %v1005_v10 = vpop.eup %1004  ;;  %819 = vst [vmem:[%s1875_s26 + $0x140] sm:$0xff] %v755_v44  ;;  %v691_v2 = vmul.f32 %v1865_v55, %v2452_v47  ;;  %v763_v13 = vpack.c.bf16 %v684_v60, %v683_v61  ;;  %v692_v28 = vmul.f32 %v1869_v58, %v2453_v3  ;;  %v695_v32 = vmul.f32 %v1865_v55, %v2454_v4  ;;  %v2460_v44 = vld [vmem:[#allocation18_spill] sm:$0xff]  ;;  %v2467_v31 = vld [vmem:[#allocation28_spill] sm:$0xff] }
  0xb4   : > { %v1007_v18 = vpop.eup %1006  ;;  %v568_v21 = vmul.f32 %v1005_v10, %v1929_v0  ;;  %vm574_vm8 = vweird.f32 %v1005_v10  ;;  %821 = vst [vmem:[%s1875_s26 + $0x150] sm:$0xff] %v757_v45  ;;  %v765_v37 = vpack.c.bf16 %v688_v19, %v687_v34  ;;  %v696_v5 = vmul.f32 %v1869_v58, %v2455_v41  ;;  %v2457_v0 = vld [vmem:[#allocation51_spill] sm:$0xff]  ;;  %v2469_v60 = vld [vmem:[#allocation32_spill] sm:$0xff]  ;;  %v2476_v41 = vld [vmem:[#allocation46_spill] sm:$0xff] }
  0xb5   : > { %v578_v27 = vmul.f32 %v1007_v18, %v1936_v1  ;;  %vm584_vm9 = vweird.f32 %v1007_v18  ;;  %823 = vst [vmem:[%s1875_s26 + $0x160] sm:$0xff] %v759_v57  ;;  %vm575_vm10 = vmor %vm573_vm6, %vm574_vm8  ;;  %v699_v46 = vmul.f32 %v1865_v55, %v2456_v40  ;;  %v767_v38 = vpack.c.bf16 %v692_v28, %v691_v2  ;;  %v2459_v1 = vld [vmem:[#allocation13_spill] sm:$0xff]  ;;  %v2471_v49 = vld [vmem:[#allocation36_spill] sm:$0xff] }
  0xb6   : > { %v569_v33 = vmul.f32 %v1005_v10, %v568_v21  ;;  %825 = vst [vmem:[%s1875_s26 + $0x170] sm:$0xff] %v761_v14  ;;  %vm585_vm11 = vmor %vm583_vm7, %vm584_vm9  ;;  %v700_v11 = vmul.f32 %v1869_v58, %v2457_v0  ;;  %v769_v59 = vpack.c.bf16 %v696_v5, %v695_v32  ;;  %v2472_v2 = vld [vmem:[#allocation38_spill] sm:$0xff]  ;;  %v2477_v40 = vld [vmem:[#allocation48_spill] sm:$0xff] }
  0xb7   : > { %v579_v42 = vmul.f32 %v1007_v18, %v578_v27  ;;  %827 = vst [vmem:[%s1875_s26 + $0x180] sm:$0xff] %v763_v13  ;;  %v2473_v13 = vld [vmem:[#allocation40_spill] sm:$0xff]  ;;  %v2474_v28 = vld [vmem:[#allocation42_spill] sm:$0xff] }
  0xb8   : > { %v570_v54 = vmul.f32 0.5, %v569_v33  ;;  %829 = vst [vmem:[%s1875_s26 + $0x190] sm:$0xff] %v765_v37  ;;  %v771_v21 = vpack.c.bf16 %v700_v11, %v699_v46  ;;  %v2479_v11 = vld [vmem:[#allocation52_spill] sm:$0xff] }
  0xb9   : > { %v580_v8 = vmul.f32 0.5, %v579_v42  ;;  %831 = vst [vmem:[%s1875_s26 + $0x1a0] sm:$0xff] %v767_v38  ;;  %v2466_v42 = vld [vmem:[#allocation26_spill] sm:$0xff] }
  0xba   : > { %v571_v23 = vsub.f32 1.5, %v570_v54  ;;  %833 = vst [vmem:[%s1875_s26 + $0x1b0] sm:$0xff] %v769_v59  ;;  %v2478_v38 = vld [vmem:[#allocation50_spill] sm:$0xff] }
  0xbb   : > { %v581_v20 = vsub.f32 1.5, %v580_v8  ;;  %835 = vst [vmem:[%s1875_s26 + $0x1c0] sm:$0xff] %v771_v21  ;;  %v2470_v8 = vld [vmem:[#allocation34_spill] sm:$0xff] }
  0xbc   : > { %v572_v9 = vmul.f32 %v1005_v10, %v571_v23  ;;  %v2480_v21 = vld [vmem:[#allocation54_spill] sm:$0xff] }
  0xbd   : > { %v582_v15 = vmul.f32 %v1007_v18, %v581_v20  ;;  %v2475_v20 = vld [vmem:[#allocation44_spill] sm:$0xff] }
  0xbe   : > { %v2031_v22 = vsel %vm575_vm10, %v1005_v10, %v572_v9 }
  0xbf   : > { %v2034_v6 = vsel %vm585_vm11, %v1007_v18, %v582_v15  ;;  %v589_v24 = vmul.f32 %v2031_v22, %v2458_v26  ;;  %v593_v27 = vmul.f32 %v2031_v22, %v2459_v1  ;;  %v597_v43 = vmul.f32 %v2031_v22, %v2460_v44 }
  0xc0   : > { %v590_v33 = vmul.f32 %v2034_v6, %v2461_v30  ;;  %v594_v10 = vmul.f32 %v2034_v6, %v2462_v56  ;;  %v598_v18 = vmul.f32 %v2034_v6, %v2463_v52  ;;  %v601_v39 = vmul.f32 %v2031_v22, %v2464_v36  ;;  %v2484_v36 = vld [vmem:[#allocation63_spill] sm:$0xff] }
  0xc1   : > { %v602_v53 = vmul.f32 %v2034_v6, %v2465_v25  ;;  %v605_v45 = vmul.f32 %v2031_v22, %v2466_v42  ;;  %v606_v48 = vmul.f32 %v2034_v6, %v2467_v31  ;;  %v609_v61 = vmul.f32 %v2031_v22, %v2468_v51  ;;  %v2485_v25 = vld [vmem:[#allocation64_spill] sm:$0xff] }
  0xc2   : > { %v716_v54 = vpack.c.bf16 %v590_v33, %v589_v24  ;;  %v718_v57 = vpack.c.bf16 %v594_v10, %v593_v27  ;;  %v720_v17 = vpack.c.bf16 %v598_v18, %v597_v43  ;;  %v610_v63 = vmul.f32 %v2034_v6, %v2469_v60  ;;  %v2481_v24 = vld [vmem:[#allocation56_spill] sm:$0xff]  ;;  %v2482_v43 = vld [vmem:[#allocation59_spill] sm:$0xff]  ;;  %v2483_v10 = vld [vmem:[#allocation61_spill] sm:$0xff] }
  0xc3   : > { %v722_v34 = vpack.c.bf16 %v602_v53, %v601_v39  ;;  %v613_v14 = vmul.f32 %v2031_v22, %v2470_v8  ;;  %v614_v19 = vmul.f32 %v2034_v6, %v2471_v49  ;;  %v724_v47 = vpack.c.bf16 %v606_v48, %v605_v45  ;;  %v2486_v53 = vld [vmem:[#allocation65_spill] sm:$0xff]  ;;  %v2487_v45 = vld [vmem:[#allocation66_spill] sm:$0xff] }
  0xc4   : > { %780 = vst [vmem:[%s1875_s26 + $0x8] sm:$0xff] %v716_v54  ;;  %v617_v23 = vmul.f32 %v2031_v22, %v2472_v2  ;;  %v618_v3 = vmul.f32 %v2034_v6, %v2473_v13  ;;  %v621_v4 = vmul.f32 %v2031_v22, %v2474_v28  ;;  %v726_v32 = vpack.c.bf16 %v610_v63, %v609_v61  ;;  %v2489_v54 = vld [vmem:[#allocation68_spill] sm:$0xff]  ;;  %v2494_v13 = vld [vmem:[#allocation71_spill] sm:$0xff] }
  0xc5   : > { %782 = vst [vmem:[%s1875_s26 + $0x18] sm:$0xff] %v718_v57  ;;  %v622_v37 = vmul.f32 %v2034_v6, %v2475_v20  ;;  %v625_v5 = vmul.f32 %v2031_v22, %v2476_v41  ;;  %v626_v46 = vmul.f32 %v2034_v6, %v2477_v40  ;;  %v728_v9 = vpack.c.bf16 %v614_v19, %v613_v14  ;;  %v2492_v14 = vld [vmem:[#allocation70_spill] sm:$0xff]  ;;  %v2493_v19 = vld [vmem:[#allocation55_spill] sm:$0xff]  ;;  %v2495_v28 = vld [vmem:[#allocation72_spill] sm:$0xff] }
  0xc6   : > { %784 = vst [vmem:[%s1875_s26 + $0x28] sm:$0xff] %v720_v17  ;;  %v629_v0 = vmul.f32 %v2031_v22, %v2478_v38  ;;  %v630_v15 = vmul.f32 %v2034_v6, %v2479_v11  ;;  %v730_v59 = vpack.c.bf16 %v618_v3, %v617_v23  ;;  %v633_v26 = vmul.f32 %v2031_v22, %v2480_v21  ;;  %v2490_v17 = vld [vmem:[#allocation53_spill] sm:$0xff] }
  0xc7   : > { %786 = vst [vmem:[%s1875_s26 + $0x38] sm:$0xff] %v722_v34  ;;  %v634_v1 = vmul.f32 %v2034_v6, %v2481_v24  ;;  %v732_v27 = vpack.c.bf16 %v622_v37, %v621_v4  ;;  %v637_v44 = vmul.f32 %v2031_v22, %v1630_v35  ;;  %v638_v30 = vmul.f32 %v2034_v6, %v2482_v43  ;;  %v2491_v34 = vld [vmem:[#allocation69_spill] sm:$0xff]  ;;  %v2497_v37 = vld [vmem:[#allocation74_spill] sm:$0xff] }
  0xc8   : > { %788 = vst [vmem:[%s1875_s26 + $0x48] sm:$0xff] %v724_v47  ;;  %v734_v33 = vpack.c.bf16 %v626_v46, %v625_v5  ;;  %v736_v56 = vpack.c.bf16 %v630_v15, %v629_v0  ;;  %v641_v52 = vmul.f32 %v2031_v22, %v2483_v10  ;;  %v642_v18 = vmul.f32 %v2034_v6, %v1660_v16  ;;  %v2488_v16 = vld [vmem:[#allocation67_spill] sm:$0xff]  ;;  %v2499_v46 = vld [vmem:[#allocation76_spill] sm:$0xff]  ;;  %v2500_v0 = vld [vmem:[#allocation77_spill] sm:$0xff] }
  0xc9   : > { %790 = vst [vmem:[%s1875_s26 + $0x58] sm:$0xff] %v726_v32  ;;  %v645_v39 = vmul.f32 %v2031_v22, %v2484_v36  ;;  %v646_v35 = vmul.f32 %v2034_v6, %v2485_v25  ;;  %v649_v42 = vmul.f32 %v2031_v22, %v2486_v53  ;;  %v650_v31 = vmul.f32 %v2034_v6, %v2487_v45  ;;  %v2496_v32 = vld [vmem:[#allocation73_spill] sm:$0xff]  ;;  %v2498_v5 = vld [vmem:[#allocation75_spill] sm:$0xff]  ;;  %v2501_v15 = vld [vmem:[#allocation78_spill] sm:$0xff] }
  0xca   : > { %792 = vst [vmem:[%s1875_s26 + $0x68] sm:$0xff] %v728_v9  ;;  %v738_v48 = vpack.c.bf16 %v634_v1, %v633_v26  ;;  %v740_v51 = vpack.c.bf16 %v638_v30, %v637_v44  ;;  %v653_v61 = vmul.f32 %v2031_v22, %v2488_v16  ;;  %v654_v57 = vmul.f32 %v2034_v6, %v2489_v54  ;;  %v2502_v21 = vld [vmem:[#allocation57_spill] sm:$0xff]  ;;  %v2503_v1 = vld [vmem:[#allocation79_spill] sm:$0xff]  ;;  %v2504_v44 = vld [vmem:[#allocation80_spill] sm:$0xff] }
  0xcb   : > { %794 = vst [vmem:[%s1875_s26 + $0x78] sm:$0xff] %v730_v59  ;;  %v2117_v60 = vmul.f32 %v1865_v55, %v2490_v17  ;;  %v742_v63 = vpack.c.bf16 %v642_v18, %v641_v52  ;;  %v657_v8 = vmul.f32 %v2031_v22, %v2491_v34  ;;  %v658_v49 = vmul.f32 %v2034_v6, %v2492_v14  ;;  %v2505_v30 = vld [vmem:[#allocation58_spill] sm:$0xff]  ;;  %v2506_v18 = vld [vmem:[#allocation81_spill] sm:$0xff]  ;;  %v2508_v53 = vld [vmem:[#allocation83_spill] sm:$0xff] }
  0xcc   : > { %796 = vst [vmem:[%s1875_s26 + $0x88] sm:$0xff] %v732_v27  ;;  %v2126_v47 = vmul.f32 %v1869_v58, %v2493_v19  ;;  %v744_v2 = vpack.c.bf16 %v646_v35, %v645_v39  ;;  %v746_v23 = vpack.c.bf16 %v650_v31, %v649_v42  ;;  %v661_v3 = vmul.f32 %v2031_v22, %v2494_v13  ;;  %v2507_v39 = vld [vmem:[#allocation82_spill] sm:$0xff]  ;;  %v2509_v45 = vld [vmem:[#allocation84_spill] sm:$0xff]  ;;  %v2510_v16 = vld [vmem:[#allocation85_spill] sm:$0xff] }
  0xcd   : > { %798 = vst [vmem:[%s1875_s26 + $0x98] sm:$0xff] %v734_v33  ;;  %v662_v4 = vmul.f32 %v2034_v6, %v2495_v28  ;;  %v665_v20 = vmul.f32 %v2031_v22, %v2496_v32  ;;  %v666_v41 = vmul.f32 %v2034_v6, %v2497_v37  ;;  %v669_v40 = vmul.f32 %v2031_v22, %v2498_v5  ;;  %v2511_v54 = vld [vmem:[#allocation86_spill] sm:$0xff]  ;;  %v2516_v13 = vld [vmem:[#allocation89_spill] sm:$0xff]  ;;  %v2519_v5 = vld [vmem:[#allocation92_spill] sm:$0xff] }
  0xce   : > { %800 = vst [vmem:[%s1875_s26 + $0xa8] sm:$0xff] %v736_v56  ;;  %v670_v9 = vmul.f32 %v2034_v6, %v2499_v46  ;;  %v748_v38 = vpack.c.bf16 %v654_v57, %v653_v61  ;;  %v673_v11 = vmul.f32 %v2031_v22, %v2500_v0  ;;  %v674_v59 = vmul.f32 %v2034_v6, %v2501_v15  ;;  %v2515_v19 = vld [vmem:[#allocation62_spill] sm:$0xff] }
  0xcf   : > { %802 = vst [vmem:[%s1875_s26 + $0xb8] sm:$0xff] %v738_v48  ;;  %v2149_v26 = vmul.f32 %v1865_v55, %v2502_v21  ;;  %v750_v24 = vpack.c.bf16 %v658_v49, %v657_v8  ;;  %v677_v27 = vmul.f32 %v2031_v22, %v2503_v1  ;;  %v678_v43 = vmul.f32 %v2034_v6, %v2504_v44  ;;  %v2513_v8 = vld [vmem:[#allocation88_spill] sm:$0xff] }
  0xd0   : > { %804 = vst [vmem:[%s1875_s26 + $0xc8] sm:$0xff] %v740_v51  ;;  %v708_v33 = vmul.f32 %v1869_v58, %v2505_v30  ;;  %v752_v56 = vpack.c.bf16 %v662_v4, %v661_v3  ;;  %v754_v10 = vpack.c.bf16 %v666_v41, %v665_v20  ;;  %v756_v52 = vpack.c.bf16 %v670_v9, %v669_v40  ;;  %v2517_v4 = vld [vmem:[#allocation90_spill] sm:$0xff] }
  0xd1   : > { %806 = vst [vmem:[%s1875_s26 + $0xd8] sm:$0xff] %v742_v63  ;;  %v681_v36 = vmul.f32 %v2031_v22, %v2506_v18  ;;  %v682_v25 = vmul.f32 %v2034_v6, %v2507_v39  ;;  %v758_v35 = vpack.c.bf16 %v674_v59, %v673_v11  ;;  %v685_v42 = vmul.f32 %v2031_v22, %v2508_v53  ;;  %v2512_v63 = vld [vmem:[#allocation87_spill] sm:$0xff] }
  0xd2   : > { %808 = vst [vmem:[%s1875_s26 + $0xe8] sm:$0xff] %v744_v2  ;;  %v686_v31 = vmul.f32 %v2034_v6, %v2509_v45  ;;  %v773_v48 = vpack.c.bf16 %v2126_v47, %v2117_v60  ;;  %v760_v51 = vpack.c.bf16 %v678_v43, %v677_v27  ;;  %v689_v61 = vmul.f32 %v2031_v22, %v2510_v16  ;;  %v2514_v60 = vld [vmem:[#allocation60_spill] sm:$0xff] }
  0xd3   : > { %810 = vst [vmem:[%s1875_s26 + $0xf8] sm:$0xff] %v746_v23  ;;  %v690_v57 = vmul.f32 %v2034_v6, %v2511_v54  ;;  %v775_v17 = vpack.c.bf16 %v708_v33, %v2149_v26  ;;  %v693_v34 = vmul.f32 %v2031_v22, %v2512_v63  ;;  %v694_v14 = vmul.f32 %v2034_v6, %v2513_v8 }
  0xd4   : > { %812 = vst [vmem:[%s1875_s26 + $0x108] sm:$0xff] %v748_v38  ;;  %v711_v49 = vmul.f32 %v1865_v55, %v2514_v60  ;;  %v712_v47 = vmul.f32 %v1869_v58, %v2515_v19  ;;  %v762_v2 = vpack.c.bf16 %v682_v25, %v681_v36  ;;  %v697_v23 = vmul.f32 %v2031_v22, %v1807_v62  ;;  %v2518_v55 = vld [vmem:[#allocation91_spill] sm:$0xff]  ;;  %v2520_v38 = vld [vmem:[#allocation93_spill] sm:$0xff] }
  0xd5   : > { %814 = vst [vmem:[%s1875_s26 + $0x118] sm:$0xff] %v750_v24  ;;  %v698_v3 = vmul.f32 %v2034_v6, %v2516_v13  ;;  %v764_v28 = vpack.c.bf16 %v686_v31, %v685_v42  ;;  %v701_v32 = vmul.f32 %v2031_v22, %v2517_v4  ;;  %v702_v58 = vmul.f32 %v2034_v6, %v2518_v55 }
  0xd6   : > { %816 = vst [vmem:[%s1875_s26 + $0x128] sm:$0xff] %v752_v56  ;;  %v777_v20 = vpack.c.bf16 %v712_v47, %v711_v49  ;;  %v766_v37 = vpack.c.bf16 %v690_v57, %v689_v61  ;;  %v768_v41 = vpack.c.bf16 %v694_v14, %v693_v34  ;;  %v705_v62 = vmul.f32 %v2031_v22, %v1824_v29 }
  0xd7   : > { %818 = vst [vmem:[%s1875_s26 + $0x138] sm:$0xff] %v754_v10  ;;  %v706_v40 = vmul.f32 %v2034_v6, %v2519_v5  ;;  %v770_v46 = vpack.c.bf16 %v698_v3, %v697_v23  ;;  %v772_v9 = vpack.c.bf16 %v702_v58, %v701_v32  ;;  %v709_v0 = vmul.f32 %v2031_v22, %v2520_v38 }
  0xd8   : > { %820 = vst [vmem:[%s1875_s26 + $0x148] sm:$0xff] %v756_v52  ;;  %v710_v11 = vmul.f32 %v2034_v6, %v1848_v50  ;;  %v713_v15 = vmul.f32 %v2031_v22, %v1851_v12  ;;  %v714_v59 = vmul.f32 %v2034_v6, %v1856_v7 }
  0xd9   : > { %822 = vst [vmem:[%s1875_s26 + $0x158] sm:$0xff] %v758_v35  ;;  %v774_v29 = vpack.c.bf16 %v706_v40, %v705_v62 }
  0xda   : > { %824 = vst [vmem:[%s1875_s26 + $0x168] sm:$0xff] %v760_v51  ;;  %v776_v50 = vpack.c.bf16 %v710_v11, %v709_v0  ;;  %v778_v21 = vpack.c.bf16 %v714_v59, %v713_v15 }
  0xdb   : > { %826 = vst [vmem:[%s1875_s26 + $0x178] sm:$0xff] %v762_v2 }
  0xdc   : > { %828 = vst [vmem:[%s1875_s26 + $0x188] sm:$0xff] %v764_v28 }
  0xdd   : > { %830 = vst [vmem:[%s1875_s26 + $0x198] sm:$0xff] %v766_v37 }
  0xde   : > { %832 = vst [vmem:[%s1875_s26 + $0x1a8] sm:$0xff] %v768_v41 }
  0xdf   : > { %834 = vst [vmem:[%s1875_s26 + $0x1b8] sm:$0xff] %v770_v46 }
  0xe0   : > { %836 = vst [vmem:[%s1875_s26 + $0x1c8] sm:$0xff] %v772_v9 }
  0xe1   : > { %837 = vst [vmem:[%s1875_s26 + $0x1d0] sm:$0xff] %v773_v48 }
  0xe2   : > { %838 = vst [vmem:[%s1875_s26 + $0x1d8] sm:$0xff] %v774_v29 }
  0xe3   : > { %839 = vst [vmem:[%s1875_s26 + $0x1e0] sm:$0xff] %v775_v17 }
  0xe4   : > { %840 = vst [vmem:[%s1875_s26 + $0x1e8] sm:$0xff] %v776_v50 }
  0xe5   : > { %841 = vst [vmem:[%s1875_s26 + $0x1f0] sm:$0xff] %v777_v20 }
  0xe6   : > { %842 = vst [vmem:[%s1875_s26 + $0x1f8] sm:$0xff] %v778_v21 }
  0xe7   : > { %1065 = shalt.err (!%p1062_p7)
}
  0xe8   : > { %s1109_s21 = smov 256   ;;  %s1110_s22 = smov 512  }
  0xe9   : > { %s1111_s23 = smov 16  }
  0xea   : > { %950 = dma.vmem_to_hbm [thread:$0]  (%p1172_p11), %s857_s10, 8192, %s859_s2, %s844_s3, %s1109_s21, %s1110_s22, %s1111_s23  }
  0xeb PF: > { %s873_s24 = sand.u32 1, %s1092_s6   ;;  %p957_p8 = pnand %p934_p9, %p1176_p12 }
  0xec   : > { %s874_s25 = scalar_lea.sflag [#allocation4], %s873_s24 }
  0xed   : > { %p958_p10 = pneg %p957_p8 }
  0xef   : > { %1087 = dma.done.wait (%p958_p10), %s874_s25, 8192  }
  0xf0   : > { %1089 = vsyncadd (%p958_p10), %s874_s25, 4294959104  ;;  %p14_p1 = scmp.ge.s32.totalorder %s1147_s12, 4   ;;  %s2521_s6 = smov %s1096_s7 }
  0xf1   : > { %s2522_s7 = smov %s1100_s8  ;;  %s2523_s8 = smov %s1159_s15 }
  0xf2   : > { %s2524_s9 = smov %s1147_s12  ;;  %16 = sbr.rel (!%p14_p1) target bundleno = 5 (0x5), region = 69 }
  0xf7   :  { %880 = vsyncpa [#allocation3], 1 }
  0xf8   :  { %882 = vsyncpa [#allocation3 + $0x1], 1 }
  0xf9   :  { %883 = vsyncpa [#allocation4], 1 }
  0xfa   :  { %885 = vsyncpa [#allocation4 + $0x1], 1 }

</bundles_post_ra>
